<compile_context>
chip_gen: v7x
topology: tpu7x:2x2x1
jax: 0.10.0
libtpu: 0.0.40
codegen_flags: <defaults>
</compile_context>

<pallas_src>
import jax
import jax.numpy as jnp
from jax.experimental import pallas as pl
from jax.experimental.pallas import tpu as pltpu

# --- hyperparameters (hp.conv = atom_dim, hp.hid_dim = hidden dim) ---
ATOM_DIM = 32            # hp.conv
HID_DIM = 64             # hp.hid_dim
NUM_LAYERS = 3
NEG_SLOPE = 0.01         # F.leaky_relu default
MASK_VAL = -9e15         # -9000000000000000.0 in the reference (missing edge)
CROSS_MASK_VAL = -1.8e16  # cross-graph pairs: strictly below MASK_VAL


def gat_kernel(x_ref, bias_ref, w_ref, b_ref, a_ref, wt_ref, bt_ref, out_ref):
    x = x_ref[...]                     # (BtN, D)  flat node features (Bt graphs)
    bias = bias_ref[...]               # (BtN, BtN) additive adjacency + block-diag mask
    w_all = w_ref[...]                 # (L, D, D)
    b_all = b_ref[...]                 # (L, D)
    a_all = a_ref[...]                 # (2L, D)  rows 2i / 2i+1 = a1 / a2 of layer i
    wt = wt_ref[...]                   # (D, H)
    bt = bt_ref[...]                   # (1, H)

    for i in range(NUM_LAYERS):
        # h = relu(Linear_i(x)) : single dense MXU matmul over all fused rows.
        h = jnp.maximum(
            jnp.dot(x, w_all[i], preferred_element_type=jnp.float32) + b_all[i],
            0.0,
        )                                                           # (BtN, D)

        # Attention logits e[r, c] = leaky_relu(h_r . a1 + h_c . a2).
        # f1: lane reduction (per row); f2: small transpose + sublane reduction so the
        # result is lane-major and broadcasts straight into a dense (BtN, BtN) tile.
        f1 = jnp.sum(h * a_all[2 * i], axis=-1, keepdims=True)      # (BtN, 1)
        f2 = jnp.sum(h.T * a_all[2 * i + 1][:, None], axis=0,
                     keepdims=True)                                  # (1, BtN)
        e = f1 + f2                                                  # (BtN, BtN)
        e = jnp.maximum(e, NEG_SLOPE * e)                            # leaky_relu

        # Masked softmax over neighbours; the bias also zeroes cross-graph pairs,
        # so `att` is exactly block-diagonal over the Bt fused graphs.
        att = e + bias
        att = att - jnp.max(att, axis=-1, keepdims=True)
        att = jnp.exp(att)
        att = att / jnp.sum(att, axis=-1, keepdims=True)
        # TODO(synk): attention dropout skipped (eval-mode semantics, identity).

        # Residual aggregation: one dense (BtN, BtN) @ (BtN, D) MXU matmul
        # (block-diagonal att == per-graph att @ h).
        x = x + jnp.dot(att, h, preferred_element_type=jnp.float32)

    # Final projection relu(W_gnn_trans(x)), stored as a dense (BtN, H) slab.
    out = jnp.maximum(
        jnp.dot(x, wt, preferred_element_type=jnp.float32) + bt, 0.0)
    out_ref[...] = out.astype(out_ref.dtype)
    # TODO(synk): final dropout skipped (eval-mode semantics, identity).


def gat_forward(x, adj, W, b, a, Wt, bt, *, target_rows=128):
    B, N, D = x.shape
    H = Wt.shape[-1]

    # Batch-fusion factor: enough rows to fill the MXU M-dimension (~128),
    # a divisor of B, and >= 2 grid steps when B allows (megacore sharding).
    bt_target = max(1, -(-target_rows // N))       # ceil(target_rows / N)
    Bt = min(B, bt_target)
    while B % Bt:
        Bt -= 1
    if (Bt * N) % 8 != 0:
        Bt = B                                     # single full-extent block
    G = B // Bt
    BtN = Bt * N

    # Lane-friendly parameter layouts.
    b2 = b.reshape(NUM_LAYERS, D)                          # (L, D)
    a2 = a[:, :, 0].reshape(NUM_LAYERS * 2, D)             # (2L, D): rows a1_i, a2_i

    # Flat node-feature slab (row = graph-major, node-minor).
    x_flat = x.reshape(B * N, D)

    # Additive attention bias, block-diagonal over the Bt graphs fused per grid step:
    #   allowed edge -> 0, missing edge -> MASK_VAL (absorbed, matches the reference
    #   select exactly), cross-graph pair -> CROSS_MASK_VAL (< MASK_VAL, so degenerate
    #   all-masked rows still normalise over their own graph like the reference).
    adjb = jnp.where(adj > 0, 0.0, jnp.float32(MASK_VAL)).astype(jnp.float32)
    adjb = adjb.reshape(G, Bt, N, N)
    same_graph = jnp.arange(Bt)[:, None] == jnp.arange(Bt)[None, :]     # (Bt, Bt)
    bias = jnp.where(same_graph[None, :, None, :, None],
                     adjb[:, :, :, None, :],
                     jnp.float32(CROSS_MASK_VAL))                       # (G,Bt,N,Bt,N)
    bias = bias.reshape(G * BtN, BtN)

    out_flat = pl.pallas_call(
        gat_kernel,
        out_shape=jax.ShapeDtypeStruct((B * N, H), jnp.float32),
        grid_spec=pltpu.PrefetchScalarGridSpec(
            num_scalar_prefetch=0,
            grid=(G,),
            in_specs=[
                pl.BlockSpec((BtN, D), lambda g: (g, 0)),                # x rows
                pl.BlockSpec((BtN, BtN), lambda g: (g, 0)),              # attention bias
                pl.BlockSpec((NUM_LAYERS, D, D), lambda g: (0, 0, 0)),   # W_gnn
                pl.BlockSpec((NUM_LAYERS, D), lambda g: (0, 0)),         # biases
                pl.BlockSpec((NUM_LAYERS * 2, D), lambda g: (0, 0)),     # attn vectors
                pl.BlockSpec((D, H), lambda g: (0, 0)),                  # W_trans
                pl.BlockSpec((1, H), lambda g: (0, 0)),                  # b_trans
            ],
            out_specs=pl.BlockSpec((BtN, H), lambda g: (g, 0)),
        ),
        compiler_params=pltpu.CompilerParams(
            dimension_semantics=("parallel",),
        ),
    )(x_flat, bias, W, b2, a2, Wt, bt)
    return out_flat.reshape(B, N, H)


def gat_reference(x, adj, W, b, a, Wt, bt):
    """Pure-JAX reference mirroring the PyTorch forward (eval mode)."""
    D = x.shape[-1]
    for i in range(NUM_LAYERS):
        h = jax.nn.relu(x @ W[i] + b[i])                      # (B, N, D)
        f1 = h @ a[i, :D, 0]                                  # (B, N)
        f2 = h @ a[i, D:, 0]                                  # (B, N)
        e = f1[:, :, None] + f2[:, None, :]                   # (B, N, N)
        e = jnp.where(e > 0, e, NEG_SLOPE * e)
        att = jnp.where(adj > 0, e, MASK_VAL)
        att = jax.nn.softmax(att, axis=-1)
        x = x + att @ h
    return jax.nn.relu(x @ Wt + bt)


if __name__ == "__main__":
    # Small shapes consistent with the module; B=32, N=8 gives two batch-fused
    # grid steps of 16 graphs = 128-row lane-dense tiles.
    B, N, D, H = 32, 8, ATOM_DIM, HID_DIM

    key = jax.random.PRNGKey(0)
    ks = jax.random.split(key, 8)

    # deterministic synthetic parameters (shapes match the nn.Module __init__)
    W = jax.random.normal(ks[0], (NUM_LAYERS, D, D), jnp.float32) * 0.1
    b = jax.random.normal(ks[1], (NUM_LAYERS, 1, D), jnp.float32) * 0.1
    a = jax.random.normal(ks[2], (NUM_LAYERS, 2 * D, 1), jnp.float32)  # torch.randn
    Wt = jax.random.normal(ks[3], (D, H), jnp.float32) * 0.1
    bt = jax.random.normal(ks[4], (1, H), jnp.float32) * 0.1

    # inputs
    x = jax.random.normal(ks[5], (B, N, D), jnp.float32)
    adj = (jax.random.uniform(ks[6], (B, N, N)) > 0.5).astype(jnp.float32)
    adj = jnp.maximum(adj, jnp.eye(N, dtype=jnp.float32)[None, :, :])  # self-loops

    out = gat_forward(x, adj, W, b, a, Wt, bt)
    out = jax.block_until_ready(out)

    ref = gat_reference(x, adj, W, b, a, Wt, bt)
    assert out.shape == (B, N, H)
    assert jnp.allclose(out, ref, atol=1e-4, rtol=1e-4), "mismatch vs reference"

    print("KERNEL_OK")
</pallas_src>

<mosaic_0001>
module attributes {stable_mosaic.version = 11 : i64} {
  func.func @gat_kernel(%arg0: i32, %arg1: memref<128x32xf32, #tpu.memory_space<vmem>>, %arg2: memref<128x128xf32, #tpu.memory_space<vmem>>, %arg3: memref<3x32x32xf32, #tpu.memory_space<vmem>>, %arg4: memref<3x32xf32, #tpu.memory_space<vmem>>, %arg5: memref<6x32xf32, #tpu.memory_space<vmem>>, %arg6: memref<32x64xf32, #tpu.memory_space<vmem>>, %arg7: memref<1x64xf32, #tpu.memory_space<vmem>>, %arg8: memref<128x64xf32, #tpu.memory_space<vmem>>) attributes {dimension_semantics = [#tpu.dimension_semantics<parallel>], iteration_bounds = array<i64: 2>, scalar_prefetch = 0 : i64, scratch_operands = 0 : i64, tpu.core_type = #tpu.core_type<tc>, window_params = [{transform_indices = @transform_0, window_bounds = array<i64: 128, 32>}, {transform_indices = @transform_1, window_bounds = array<i64: 128, 128>}, {pipeline_mode = #tpu.pipeline_mode<synchronous>, transform_indices = @transform_2, window_bounds = array<i64: 3, 32, 32>}, {pipeline_mode = #tpu.pipeline_mode<synchronous>, transform_indices = @transform_3, window_bounds = array<i64: 3, 32>}, {pipeline_mode = #tpu.pipeline_mode<synchronous>, transform_indices = @transform_4, window_bounds = array<i64: 6, 32>}, {pipeline_mode = #tpu.pipeline_mode<synchronous>, transform_indices = @transform_5, window_bounds = array<i64: 32, 64>}, {pipeline_mode = #tpu.pipeline_mode<synchronous>, transform_indices = @transform_6, window_bounds = array<i64: 1, 64>}, {transform_indices = @transform_7, window_bounds = array<i64: 128, 64>}]} {
    %c0 = arith.constant 0 : index
    %c0_0 = arith.constant 0 : index
    %0 = vector.load %arg1[%c0, %c0_0] : memref<128x32xf32, #tpu.memory_space<vmem>>, vector<128x32xf32>
    %c0_1 = arith.constant 0 : index
    %c0_2 = arith.constant 0 : index
    %1 = vector.load %arg2[%c0_1, %c0_2] : memref<128x128xf32, #tpu.memory_space<vmem>>, vector<128x128xf32>
    %c0_3 = arith.constant 0 : index
    %c0_4 = arith.constant 0 : index
    %c0_5 = arith.constant 0 : index
    %2 = vector.load %arg3[%c0_3, %c0_4, %c0_5] : memref<3x32x32xf32, #tpu.memory_space<vmem>>, vector<3x32x32xf32>
    %c0_6 = arith.constant 0 : index
    %c0_7 = arith.constant 0 : index
    %3 = vector.load %arg4[%c0_6, %c0_7] : memref<3x32xf32, #tpu.memory_space<vmem>>, vector<3x32xf32>
    %c0_8 = arith.constant 0 : index
    %c0_9 = arith.constant 0 : index
    %4 = vector.load %arg5[%c0_8, %c0_9] : memref<6x32xf32, #tpu.memory_space<vmem>>, vector<6x32xf32>
    %c0_10 = arith.constant 0 : index
    %c0_11 = arith.constant 0 : index
    %5 = vector.load %arg6[%c0_10, %c0_11] : memref<32x64xf32, #tpu.memory_space<vmem>>, vector<32x64xf32>
    %c0_12 = arith.constant 0 : index
    %c0_13 = arith.constant 0 : index
    %6 = vector.load %arg7[%c0_12, %c0_13] : memref<1x64xf32, #tpu.memory_space<vmem>>, vector<1x64xf32>
    %7 = vector.extract_strided_slice %2 {offsets = [0, 0, 0], sizes = [1, 32, 32], strides = [1, 1, 1]} : vector<3x32x32xf32> to vector<1x32x32xf32>
    %8 = vector.shape_cast %7 : vector<1x32x32xf32> to vector<32x32xf32>
    %cst = arith.constant dense<0.000000e+00> : vector<128x32xf32>
    %9 = tpu.matmul %0, %8, %cst {dimension_numbers = #tpu.dot_dimension_numbers<[1], [0], [0], [1], [0, 0, 1, 1], [], []>} : vector<128x32xf32>, vector<32x32xf32>, vector<128x32xf32> -> vector<128x32xf32>
    %10 = vector.extract_strided_slice %3 {offsets = [0, 0], sizes = [1, 32], strides = [1, 1]} : vector<3x32xf32> to vector<1x32xf32>
    %11 = vector.shape_cast %10 : vector<1x32xf32> to vector<32xf32>
    %12 = vector.shape_cast %11 : vector<32xf32> to vector<1x32xf32>
    %13 = vector.broadcast %12 : vector<1x32xf32> to vector<128x32xf32>
    %14 = arith.addf %9, %13 : vector<128x32xf32>
    %cst_14 = arith.constant 0.000000e+00 : f32
    %15 = vector.broadcast %cst_14 : f32 to vector<128x32xf32>
    %16 = arith.maximumf %14, %15 : vector<128x32xf32>
    %17 = vector.extract_strided_slice %4 {offsets = [0, 0], sizes = [1, 32], strides = [1, 1]} : vector<6x32xf32> to vector<1x32xf32>
    %18 = vector.shape_cast %17 : vector<1x32xf32> to vector<32xf32>
    %19 = vector.shape_cast %18 : vector<32xf32> to vector<1x32xf32>
    %20 = vector.broadcast %19 : vector<1x32xf32> to vector<128x32xf32>
    %21 = arith.mulf %16, %20 : vector<128x32xf32>
    %cst_15 = arith.constant dense<0.000000e+00> : vector<128xf32>
    %22 = vector.multi_reduction <add>, %21, %cst_15 [1] : vector<128x32xf32> to vector<128xf32>
    %23 = vector.shape_cast %22 : vector<128xf32> to vector<128x1xf32>
    %24 = tpu.transpose %16, [1, 0] : vector<128x32xf32> -> vector<32x128xf32>
    %25 = vector.extract_strided_slice %4 {offsets = [1, 0], sizes = [1, 32], strides = [1, 1]} : vector<6x32xf32> to vector<1x32xf32>
    %26 = vector.shape_cast %25 : vector<1x32xf32> to vector<32xf32>
    %27 = vector.shape_cast %26 : vector<32xf32> to vector<32x1xf32>
    %28 = vector.broadcast %27 : vector<32x1xf32> to vector<32x128xf32>
    %29 = arith.mulf %24, %28 : vector<32x128xf32>
    %cst_16 = arith.constant dense<0.000000e+00> : vector<128xf32>
    %30 = vector.multi_reduction <add>, %29, %cst_16 [0] : vector<32x128xf32> to vector<128xf32>
    %31 = vector.shape_cast %30 : vector<128xf32> to vector<1x128xf32>
    %32 = vector.broadcast %23 : vector<128x1xf32> to vector<128x128xf32>
    %33 = vector.broadcast %31 : vector<1x128xf32> to vector<128x128xf32>
    %34 = arith.addf %32, %33 : vector<128x128xf32>
    %cst_17 = arith.constant 0.00999999977 : f32
    %35 = vector.broadcast %cst_17 : f32 to vector<128x128xf32>
    %36 = arith.mulf %35, %34 : vector<128x128xf32>
    %37 = arith.maximumf %34, %36 : vector<128x128xf32>
    %38 = arith.addf %37, %1 : vector<128x128xf32>
    %cst_18 = arith.constant dense<0xFF800000> : vector<128xf32>
    %39 = vector.multi_reduction <maximumf>, %38, %cst_18 [1] : vector<128x128xf32> to vector<128xf32>
    %40 = vector.shape_cast %39 : vector<128xf32> to vector<128x1xf32>
    %41 = vector.broadcast %40 : vector<128x1xf32> to vector<128x128xf32>
    %42 = arith.subf %38, %41 : vector<128x128xf32>
    %43 = math.exp %42 : vector<128x128xf32>
    %cst_19 = arith.constant dense<0.000000e+00> : vector<128xf32>
    %44 = vector.multi_reduction <add>, %43, %cst_19 [1] : vector<128x128xf32> to vector<128xf32>
    %45 = vector.shape_cast %44 : vector<128xf32> to vector<128x1xf32>
    %46 = vector.broadcast %45 : vector<128x1xf32> to vector<128x128xf32>
    %47 = arith.divf %43, %46 : vector<128x128xf32>
    %cst_20 = arith.constant dense<0.000000e+00> : vector<128x32xf32>
    %48 = tpu.matmul %47, %16, %cst_20 {dimension_numbers = #tpu.dot_dimension_numbers<[1], [0], [0], [1], [0, 0, 1, 1], [], []>} : vector<128x128xf32>, vector<128x32xf32>, vector<128x32xf32> -> vector<128x32xf32>
    %49 = arith.addf %0, %48 : vector<128x32xf32>
    %50 = vector.extract_strided_slice %2 {offsets = [1, 0, 0], sizes = [1, 32, 32], strides = [1, 1, 1]} : vector<3x32x32xf32> to vector<1x32x32xf32>
    %51 = vector.shape_cast %50 : vector<1x32x32xf32> to vector<32x32xf32>
    %cst_21 = arith.constant dense<0.000000e+00> : vector<128x32xf32>
    %52 = tpu.matmul %49, %51, %cst_21 {dimension_numbers = #tpu.dot_dimension_numbers<[1], [0], [0], [1], [0, 0, 1, 1], [], []>} : vector<128x32xf32>, vector<32x32xf32>, vector<128x32xf32> -> vector<128x32xf32>
    %53 = vector.extract_strided_slice %3 {offsets = [1, 0], sizes = [1, 32], strides = [1, 1]} : vector<3x32xf32> to vector<1x32xf32>
    %54 = vector.shape_cast %53 : vector<1x32xf32> to vector<32xf32>
    %55 = vector.shape_cast %54 : vector<32xf32> to vector<1x32xf32>
    %56 = vector.broadcast %55 : vector<1x32xf32> to vector<128x32xf32>
    %57 = arith.addf %52, %56 : vector<128x32xf32>
    %cst_22 = arith.constant 0.000000e+00 : f32
    %58 = vector.broadcast %cst_22 : f32 to vector<128x32xf32>
    %59 = arith.maximumf %57, %58 : vector<128x32xf32>
    %60 = vector.extract_strided_slice %4 {offsets = [2, 0], sizes = [1, 32], strides = [1, 1]} : vector<6x32xf32> to vector<1x32xf32>
    %61 = vector.shape_cast %60 : vector<1x32xf32> to vector<32xf32>
    %62 = vector.shape_cast %61 : vector<32xf32> to vector<1x32xf32>
    %63 = vector.broadcast %62 : vector<1x32xf32> to vector<128x32xf32>
    %64 = arith.mulf %59, %63 : vector<128x32xf32>
    %cst_23 = arith.constant dense<0.000000e+00> : vector<128xf32>
    %65 = vector.multi_reduction <add>, %64, %cst_23 [1] : vector<128x32xf32> to vector<128xf32>
    %66 = vector.shape_cast %65 : vector<128xf32> to vector<128x1xf32>
    %67 = tpu.transpose %59, [1, 0] : vector<128x32xf32> -> vector<32x128xf32>
    %68 = vector.extract_strided_slice %4 {offsets = [3, 0], sizes = [1, 32], strides = [1, 1]} : vector<6x32xf32> to vector<1x32xf32>
    %69 = vector.shape_cast %68 : vector<1x32xf32> to vector<32xf32>
    %70 = vector.shape_cast %69 : vector<32xf32> to vector<32x1xf32>
    %71 = vector.broadcast %70 : vector<32x1xf32> to vector<32x128xf32>
    %72 = arith.mulf %67, %71 : vector<32x128xf32>
    %cst_24 = arith.constant dense<0.000000e+00> : vector<128xf32>
    %73 = vector.multi_reduction <add>, %72, %cst_24 [0] : vector<32x128xf32> to vector<128xf32>
    %74 = vector.shape_cast %73 : vector<128xf32> to vector<1x128xf32>
    %75 = vector.broadcast %66 : vector<128x1xf32> to vector<128x128xf32>
    %76 = vector.broadcast %74 : vector<1x128xf32> to vector<128x128xf32>
    %77 = arith.addf %75, %76 : vector<128x128xf32>
    %cst_25 = arith.constant 0.00999999977 : f32
    %78 = vector.broadcast %cst_25 : f32 to vector<128x128xf32>
    %79 = arith.mulf %78, %77 : vector<128x128xf32>
    %80 = arith.maximumf %77, %79 : vector<128x128xf32>
    %81 = arith.addf %80, %1 : vector<128x128xf32>
    %cst_26 = arith.constant dense<0xFF800000> : vector<128xf32>
    %82 = vector.multi_reduction <maximumf>, %81, %cst_26 [1] : vector<128x128xf32> to vector<128xf32>
    %83 = vector.shape_cast %82 : vector<128xf32> to vector<128x1xf32>
    %84 = vector.broadcast %83 : vector<128x1xf32> to vector<128x128xf32>
    %85 = arith.subf %81, %84 : vector<128x128xf32>
    %86 = math.exp %85 : vector<128x128xf32>
    %cst_27 = arith.constant dense<0.000000e+00> : vector<128xf32>
    %87 = vector.multi_reduction <add>, %86, %cst_27 [1] : vector<128x128xf32> to vector<128xf32>
    %88 = vector.shape_cast %87 : vector<128xf32> to vector<128x1xf32>
    %89 = vector.broadcast %88 : vector<128x1xf32> to vector<128x128xf32>
    %90 = arith.divf %86, %89 : vector<128x128xf32>
    %cst_28 = arith.constant dense<0.000000e+00> : vector<128x32xf32>
    %91 = tpu.matmul %90, %59, %cst_28 {dimension_numbers = #tpu.dot_dimension_numbers<[1], [0], [0], [1], [0, 0, 1, 1], [], []>} : vector<128x128xf32>, vector<128x32xf32>, vector<128x32xf32> -> vector<128x32xf32>
    %92 = arith.addf %49, %91 : vector<128x32xf32>
    %93 = vector.extract_strided_slice %2 {offsets = [2, 0, 0], sizes = [1, 32, 32], strides = [1, 1, 1]} : vector<3x32x32xf32> to vector<1x32x32xf32>
    %94 = vector.shape_cast %93 : vector<1x32x32xf32> to vector<32x32xf32>
    %cst_29 = arith.constant dense<0.000000e+00> : vector<128x32xf32>
    %95 = tpu.matmul %92, %94, %cst_29 {dimension_numbers = #tpu.dot_dimension_numbers<[1], [0], [0], [1], [0, 0, 1, 1], [], []>} : vector<128x32xf32>, vector<32x32xf32>, vector<128x32xf32> -> vector<128x32xf32>
    %96 = vector.extract_strided_slice %3 {offsets = [2, 0], sizes = [1, 32], strides = [1, 1]} : vector<3x32xf32> to vector<1x32xf32>
    %97 = vector.shape_cast %96 : vector<1x32xf32> to vector<32xf32>
    %98 = vector.shape_cast %97 : vector<32xf32> to vector<1x32xf32>
    %99 = vector.broadcast %98 : vector<1x32xf32> to vector<128x32xf32>
    %100 = arith.addf %95, %99 : vector<128x32xf32>
    %cst_30 = arith.constant 0.000000e+00 : f32
    %101 = vector.broadcast %cst_30 : f32 to vector<128x32xf32>
    %102 = arith.maximumf %100, %101 : vector<128x32xf32>
    %103 = vector.extract_strided_slice %4 {offsets = [4, 0], sizes = [1, 32], strides = [1, 1]} : vector<6x32xf32> to vector<1x32xf32>
    %104 = vector.shape_cast %103 : vector<1x32xf32> to vector<32xf32>
    %105 = vector.shape_cast %104 : vector<32xf32> to vector<1x32xf32>
    %106 = vector.broadcast %105 : vector<1x32xf32> to vector<128x32xf32>
    %107 = arith.mulf %102, %106 : vector<128x32xf32>
    %cst_31 = arith.constant dense<0.000000e+00> : vector<128xf32>
    %108 = vector.multi_reduction <add>, %107, %cst_31 [1] : vector<128x32xf32> to vector<128xf32>
    %109 = vector.shape_cast %108 : vector<128xf32> to vector<128x1xf32>
    %110 = tpu.transpose %102, [1, 0] : vector<128x32xf32> -> vector<32x128xf32>
    %111 = vector.extract_strided_slice %4 {offsets = [5, 0], sizes = [1, 32], strides = [1, 1]} : vector<6x32xf32> to vector<1x32xf32>
    %112 = vector.shape_cast %111 : vector<1x32xf32> to vector<32xf32>
    %113 = vector.shape_cast %112 : vector<32xf32> to vector<32x1xf32>
    %114 = vector.broadcast %113 : vector<32x1xf32> to vector<32x128xf32>
    %115 = arith.mulf %110, %114 : vector<32x128xf32>
    %cst_32 = arith.constant dense<0.000000e+00> : vector<128xf32>
    %116 = vector.multi_reduction <add>, %115, %cst_32 [0] : vector<32x128xf32> to vector<128xf32>
    %117 = vector.shape_cast %116 : vector<128xf32> to vector<1x128xf32>
    %118 = vector.broadcast %109 : vector<128x1xf32> to vector<128x128xf32>
    %119 = vector.broadcast %117 : vector<1x128xf32> to vector<128x128xf32>
    %120 = arith.addf %118, %119 : vector<128x128xf32>
    %cst_33 = arith.constant 0.00999999977 : f32
    %121 = vector.broadcast %cst_33 : f32 to vector<128x128xf32>
    %122 = arith.mulf %121, %120 : vector<128x128xf32>
    %123 = arith.maximumf %120, %122 : vector<128x128xf32>
    %124 = arith.addf %123, %1 : vector<128x128xf32>
    %cst_34 = arith.constant dense<0xFF800000> : vector<128xf32>
    %125 = vector.multi_reduction <maximumf>, %124, %cst_34 [1] : vector<128x128xf32> to vector<128xf32>
    %126 = vector.shape_cast %125 : vector<128xf32> to vector<128x1xf32>
    %127 = vector.broadcast %126 : vector<128x1xf32> to vector<128x128xf32>
    %128 = arith.subf %124, %127 : vector<128x128xf32>
    %129 = math.exp %128 : vector<128x128xf32>
    %cst_35 = arith.constant dense<0.000000e+00> : vector<128xf32>
    %130 = vector.multi_reduction <add>, %129, %cst_35 [1] : vector<128x128xf32> to vector<128xf32>
    %131 = vector.shape_cast %130 : vector<128xf32> to vector<128x1xf32>
    %132 = vector.broadcast %131 : vector<128x1xf32> to vector<128x128xf32>
    %133 = arith.divf %129, %132 : vector<128x128xf32>
    %cst_36 = arith.constant dense<0.000000e+00> : vector<128x32xf32>
    %134 = tpu.matmul %133, %102, %cst_36 {dimension_numbers = #tpu.dot_dimension_numbers<[1], [0], [0], [1], [0, 0, 1, 1], [], []>} : vector<128x128xf32>, vector<128x32xf32>, vector<128x32xf32> -> vector<128x32xf32>
    %135 = arith.addf %92, %134 : vector<128x32xf32>
    %cst_37 = arith.constant dense<0.000000e+00> : vector<128x64xf32>
    %136 = tpu.matmul %135, %5, %cst_37 {dimension_numbers = #tpu.dot_dimension_numbers<[1], [0], [0], [1], [0, 0, 1, 1], [], []>} : vector<128x32xf32>, vector<32x64xf32>, vector<128x64xf32> -> vector<128x64xf32>
    %137 = vector.broadcast %6 : vector<1x64xf32> to vector<128x64xf32>
    %138 = arith.addf %136, %137 : vector<128x64xf32>
    %cst_38 = arith.constant 0.000000e+00 : f32
    %139 = vector.broadcast %cst_38 : f32 to vector<128x64xf32>
    %140 = arith.maximumf %138, %139 : vector<128x64xf32>
    %c0_39 = arith.constant 0 : index
    %c0_40 = arith.constant 0 : index
    %141 = vector.load %arg8[%c0_39, %c0_40] : memref<128x64xf32, #tpu.memory_space<vmem>>, vector<128x64xf32>
    tpu.vector_store %arg8[%c0_39, %c0_40], %140 {strides = array<i32>} : memref<128x64xf32, #tpu.memory_space<vmem>>, vector<128x64xf32>,
    return
  }
  func.func @transform_0(%arg0: i32) -> (i32, i32) {
    %c0_i32 = arith.constant 0 : i32
    %c0_i32_0 = arith.constant 0 : i32
    return %arg0, %c0_i32 : i32, i32
  }
  func.func @transform_1(%arg0: i32) -> (i32, i32) {
    %c0_i32 = arith.constant 0 : i32
    %c0_i32_0 = arith.constant 0 : i32
    return %arg0, %c0_i32 : i32, i32
  }
  func.func @transform_2(%arg0: i32) -> (i32, i32, i32) {
    %c0_i32 = arith.constant 0 : i32
    %c0_i32_0 = arith.constant 0 : i32
    %c0_i32_1 = arith.constant 0 : i32
    %c0_i32_2 = arith.constant 0 : i32
    return %c0_i32, %c0_i32_0, %c0_i32_1 : i32, i32, i32
  }
  func.func @transform_3(%arg0: i32) -> (i32, i32) {
    %c0_i32 = arith.constant 0 : i32
    %c0_i32_0 = arith.constant 0 : i32
    %c0_i32_1 = arith.constant 0 : i32
    return %c0_i32, %c0_i32_0 : i32, i32
  }
  func.func @transform_4(%arg0: i32) -> (i32, i32) {
    %c0_i32 = arith.constant 0 : i32
    %c0_i32_0 = arith.constant 0 : i32
    %c0_i32_1 = arith.constant 0 : i32
    return %c0_i32, %c0_i32_0 : i32, i32
  }
  func.func @transform_5(%arg0: i32) -> (i32, i32) {
    %c0_i32 = arith.constant 0 : i32
    %c0_i32_0 = arith.constant 0 : i32
    %c0_i32_1 = arith.constant 0 : i32
    return %c0_i32, %c0_i32_0 : i32, i32
  }
  func.func @transform_6(%arg0: i32) -> (i32, i32) {
    %c0_i32 = arith.constant 0 : i32
    %c0_i32_0 = arith.constant 0 : i32
    %c0_i32_1 = arith.constant 0 : i32
    return %c0_i32, %c0_i32_0 : i32, i32
  }
  func.func @transform_7(%arg0: i32) -> (i32, i32) {
    %c0_i32 = arith.constant 0 : i32
    %c0_i32_0 = arith.constant 0 : i32
    return %arg0, %c0_i32 : i32, i32
  }
}

</mosaic_0001>

<bundles_post_ra>
// kernel: tpu_custom_call.1
= control target key start
LH: loop header
LB: loop body
LE: loop exit
PB: predicated region body
PF: predicated region fallthrough
CT: control target
= control target key end

     0   :  { %12 = vsyncpa [#allocation3], 0  ;;  %s3826_s24 = smov 0   ;;  %s5067_s0 = inlined_call_operand.vmem [shape: f32[256,32], index: 0, kind: input, shape index: {}]   ;;  %s5068_s1 = inlined_call_operand.vmem [shape: f32[256,128], index: 1, kind: input, shape index: {}]   ;;  %s5069_s2 = inlined_call_operand.hbm [shape: f32[3,32,32], index: 2, kind: input, shape index: {}]   ;;  %s5070_s3 = inlined_call_operand.vmem [shape: f32[3,32], index: 3, kind: input, shape index: {}]   ;;  %s5071_s4 = inlined_call_operand.vmem [shape: f32[6,32], index: 4, kind: input, shape index: {}]   ;;  %s5072_s5 = inlined_call_operand.vmem [shape: f32[32,64], index: 5, kind: input, shape index: {}]   ;;  %s5073_s6 = inlined_call_operand.vmem [shape: f32[1,64], index: 6, kind: input, shape index: {}]   ;;  %s5074_s7 = inlined_call_operand.vmem [shape: f32[256,64], index: 7, kind: output, shape index: {}]  }
   0x1 LB: > { %s2825_s25 = sadd.s32 4294967295, %s3781_s24   ;;  %p2827_p0 = scmp.ge.s32.totalorder %s3781_s24, 1  ;;  %s3781_s24 = sphi %s3826_s24, %s18_s24  }
   0x2   : > { %p206_p1 = scmp.lt.s32.totalorder %s3781_s24, 3  ;;  %s3783_s26 = smov [#allocation2]  }
   0x3   : > { %s218_s27 = sshll.u32 %s3783_s26, 4  ;;  %p3840_p3 = scmp.eq.s32.totalorder %s2825_s25, 0  ;;  %s219_s27 = int_to_ptr.vmem [resolvable:$true] %s218_s27 }
   0x4   : > { %p3834_p2 = pnand %p2827_p0, %p206_p1  ;;  %s3743_s10 = scalar_lea.hbm %s5069_s2, 1536 }
   0x5   : > { %s5079_s29 = scalar_select %p3840_p3, 1, 0 }
   0x6   : > { %s5078_s28 = scalar_select %p3834_p2, 1, 0 }
   0x7   : > { %p3513_p4 = pneg %p3834_p2  ;;  %p3744_p6 = scmp.ne.s32.totalorder %s5069_s2, %s3743_s10 }
   0x8   : > { %p3750_p10 = scmp.lt.u32.totalorder %s3743_s10, %s5069_s2 }
   0x9   : > { %p3848_p5 = pnand %p3840_p3, %p3513_p4 }
   0xb   : > { %p3745_p7 = pneg %p3848_p5 }
   0xd   : > { %p3746_p8 = pnand %p3745_p7, %p3744_p6 }
   0xf   : > { %p3747_p9 = pneg %p3746_p8 }
  0x11   : > { %p3752_p11 = pnand %p3750_p10, %p3747_p9 }
  0x13   : > { %3755 = shalt.err (!%p3752_p11)
}
  0x14   : > { %s3756_s15 = scalar_lea.vmem %s219_s27, 1536  ;;  %p3764_p1 = scmp.lt.s32.totalorder %s219_s27, %s219_s27 }
  0x15   : > { %p3757_p12 = scmp.ne.s32.totalorder %s219_s27, %s3756_s15  ;;  %p3765_p4 = scmp.lt.s32.totalorder %s3756_s15, %s3756_s15 }
  0x17   : > { %p3759_p13 = pnand %p3757_p12, %p3745_p7  ;;  %p3766_p3 = por %p3765_p4, %p3764_p1 }
  0x19   : > { %p3760_p0 = pneg %p3759_p13 }
  0x1b   : > { %p3767_p2 = pnand %p3766_p3, %p3760_p0 }
  0x1d   : > { %3770 = shalt.err (!%p3767_p2)
}
  0x1e   : > { %s3784_s16 = smov 128   ;;  %s3785_s17 = smov 8  }
  0x1f   : > { %3516 = dma.hbm_to_vmem [thread:$0]  (!%p3848_p5), %s5069_s2, 1536, %s219_s27, [#allocation3], %s3784_s16, %s3784_s16, %s3785_s17  }
  0x20   : > { %p5081_p6 = scmp.ne.s32.totalorder %s5078_s28, 0 }
  0x21   : > { %p5082_p8 = scmp.ne.s32.totalorder (!%p5081_p6), %s5079_s29, 0 }
  0x22   : > { %264 = sbr.rel (%p5081_p6) target bundleno = 3285 (0xcd5), region = 48 }
  0x29   : > { %3776 = dma.done.wait (%p5082_p8), [#allocation3], 1536  }
  0x2a   : > { %3778 = vsyncadd (%p5082_p8), [#allocation3], 4294965760  ;;  %s2832_s20 = sshll.u32 %s2825_s25, 4  ;;  %v370_v0 = vlaneseq  ;;  %vm374_vm0 = vcmask 261120   ;;  %v351_v2 = vld [vmem:[#allocation2] sm:$0xff]  ;;  %v352_v3 = vld [vmem:[#allocation2 + $0x8] sm:$0xff] }
  0x2b   : > { %p302_p2 = scmp.lt.s32.totalorder %s2832_s20, 31  ;;  %v353_v4 = vld [vmem:[#allocation2 + $0x10] sm:$0xff]  ;;  %v3377_v5 = vpack.c.bf16 %v352_v3, %v351_v2  ;;  %v354_v6 = vld [vmem:[#allocation2 + $0x18] sm:$0xff]  ;;  %v3892_v10 = vld [vmem:[%s5071_s4] sm:$0x3f]  ;;  %vm2728_vm1 = vcmask 523264  }
  0x2c   : > { %v3884_v1 = vshrl.u32 %v370_v0, 7  ;;  %v3381_v8 = vpack.c.bf16 %v354_v6, %v353_v4  ;;  %v363_v13 = vld [vmem:[%s5070_s3] sm:$0x7] }
  0x2d   : > { %s5084_s20 = smov (!%p302_p2, %s2832_s20), 31  ;;  %3378 = vmatprep.subr.bf16.mxu0 %v3377_v5 }
  0x2e   : > { %s3876_s21 = sshll.u32 %s5084_s20, 3  ;;  %v686_v9 = vsub.s32 1, %v3884_v1  ;;  %3380 = vmatpush3.bf16.msra.mxu0 %v3377_v5  ;;  %v1300_v11 = vsub.s32 2, %v3884_v1  ;;  %v372_v31 = vsub.s32 0, %v3884_v1 }
  0x2f   : > { %s3882_s26 = scalar_lea.vmem %s5067_s0, %s3876_s21  ;;  %3382 = vmatprep.subr.bf16.mxu0 %v3381_v8  ;;  %s4081_s9 = scalar_lea.vmem %s5068_s1, %s3876_s21 }
  0x30   : > { %v319_v7 = vld [vmem:[%s3882_s26] sm:$0xff]  ;;  %v687_v12 = vrot.slane %v3892_v10, %v686_v9  ;;  %v3900_v14 = vld [vmem:[%s3882_s26 + $0x8] sm:$0xff]  ;;  %v3902_v15 = vrot.slane %v363_v13, %v686_v9  ;;  %v3906_v16 = vrot.slane %v363_v13, %v1300_v11  ;;  %v3909_v17 = vld [vmem:[%s3882_s26 + $0x10] sm:$0xff]  ;;  %v3972_v32 = vrot.slane %v363_v13, %v372_v31  ;;  %s5030_s25 = scalar_lea.vmem %s5074_s7, %s3876_s21 }
  0x31   : > { %3089 = vmatprep.mubr.msk.f32.mxu0 %vm374_vm0, %v319_v7  ;;  %v3916_v18 = vld [vmem:[%s3882_s26 + $0x18] sm:$0xff]  ;;  %v3919_v19 = vld [vmem:[%s3882_s26 + $0x20] sm:$0xff]  ;;  %v3926_v20 = vld [vmem:[%s3882_s26 + $0x28] sm:$0xff]  ;;  %v3975_v34 = vrot.slane %v3892_v10, %v372_v31 }
  0x32   : > { %3384 = vmatpush3.bf16.msra.mxu0 %v3381_v8  ;;  %697 = vbcast.lane.b32.xlu1 %v687_v12, 272  ;;  %v3929_v21 = vld [vmem:[%s3882_s26 + $0x30] sm:$0xff]  ;;  %v3936_v22 = vld [vmem:[%s3882_s26 + $0x38] sm:$0xff]  ;;  %v3939_v23 = vld [vmem:[%s3882_s26 + $0x40] sm:$0xff] }
  0x33   : > { %689 = vbcast.lane.b32.xlu0 %v687_v12, 256  ;;  %v3946_v24 = vld [vmem:[%s3882_s26 + $0x48] sm:$0xff]  ;;  %v3949_v25 = vld [vmem:[%s3882_s26 + $0x50] sm:$0xff]  ;;  %v3956_v26 = vld [vmem:[%s3882_s26 + $0x58] sm:$0xff] }
  0x34   : > { %v331_v27 = vld [vmem:[%s3882_s26 + $0x60] sm:$0xff]  ;;  %v3963_v28 = vld [vmem:[%s3882_s26 + $0x68] sm:$0xff]  ;;  %v333_v29 = vld [vmem:[%s3882_s26 + $0x70] sm:$0xff] }
  0x35   : > { %3090 = vmatmul.mubr.msk.f32.vlgmr.msra.gmra.mrb[0].mxu0 %vm374_vm0, %v3900_v14  ;;  %v334_v30 = vld [vmem:[%s3882_s26 + $0x78] sm:$0xff] }
  0x36   : > { %3092 = vmatprep.mubr.msk.f32.mxu0 %vm374_vm0, %v3909_v17  ;;  %701 = vbcast.lane.b32.xlu1 %v687_v12, 280 }
  0x37   : > { %693 = vbcast.lane.b32.xlu0 %v687_v12, 264 }
  0x39   : > { %3093 = vmatmul.mubr.msk.f32.gmra.mrb[2].mxu0 %vm374_vm0, %v3916_v18 }
  0x3a   : > { %3095 = vmatprep.mubr.msk.f32.mxu0 %vm374_vm0, %v3919_v19 }
  0x3d   : > { %3096 = vmatmul.mubr.msk.f32.gmra.mrb[4].mxu0 %vm374_vm0, %v3926_v20 }
  0x3e   : > { %3098 = vmatprep.mubr.msk.f32.mxu0 %vm374_vm0, %v3929_v21 }
  0x41   : > { %3099 = vmatmul.mubr.msk.f32.gmra.mrb[6].mxu0 %vm374_vm0, %v3936_v22 }
  0x42   : > { %3101 = vmatprep.mubr.msk.f32.mxu0 %vm374_vm0, %v3939_v23 }
  0x45   : > { %3102 = vmatmul.mubr.msk.f32.gmra.mrb[8].mxu0 %vm374_vm0, %v3946_v24 }
  0x46   : > { %3104 = vmatprep.mubr.msk.f32.mxu0 %vm374_vm0, %v3949_v25 }
  0x49   : > { %3105 = vmatmul.mubr.msk.f32.gmra.mrb[10].mxu0 %vm374_vm0, %v3956_v26 }
  0x4a   : > { %3107 = vmatprep.mubr.msk.f32.mxu0 %vm374_vm0, %v331_v27 }
  0x4d   : > { %3108 = vmatmul.mubr.msk.f32.gmra.mrb[12].mxu0 %vm374_vm0, %v3963_v28 }
  0x4e   : > { %3110 = vmatprep.mubr.msk.f32.mxu0 %vm374_vm0, %v333_v29 }
  0x51   : > { %3111 = vmatmul.mubr.msk.f32.gmra.mrb[14].mxu0 %vm374_vm0, %v334_v30 }
 0x108   : > { %v3091_v33 = vpop.f32.mrb[0].mxu0 }
 0x109   : > { %v495_v35 = vadd.f32 %v3091_v33, %v3972_v32  ;;  %v489_v36 = vpop.f32.mrb[1].mxu0 }
 0x10a   : > { %v490_v37 = vadd.f32 %v489_v36, %v3972_v32 }
 0x10b   : > { %v3979_v38 = vmax.f32 %v495_v35, 0.0 }
 0x10c   : > { %v3981_v39 = vmax.f32 %v490_v37, 0.0  ;;  %v3094_v40 = vpop.f32.mrb[2].mxu0 }
 0x10d   : > { %v505_v41 = vadd.f32 %v3094_v40, %v3972_v32  ;;  %v499_v42 = vpop.f32.mrb[3].mxu0  ;;  %v589_v43 = vmul.f32 %v3975_v34, %v3979_v38 }
 0x10e   : > { %v500_v44 = vadd.f32 %v499_v42, %v3972_v32  ;;  %v3385_v45 = vpack.c.bf16 %v3979_v38, %v3981_v39  ;;  %v588_v46 = vmul.f32 %v3975_v34, %v3981_v39 }
 0x10f   : > { %v3991_v47 = vmax.f32 %v505_v41, 0.0  ;;  %v607_v48 = vsel %vm374_vm0, %v589_v43, 0.0 }
 0x110   : > { %v3994_v49 = vmax.f32 %v500_v44, 0.0  ;;  %608 = vadd.xlane.f32.xlu1 %v607_v48  ;;  %v3097_v50 = vpop.f32.mrb[4].mxu0  ;;  %3386 = vmatprep.subr.bf16.mxu1 %v3385_v45  ;;  %v604_v51 = vsel %vm374_vm0, %v588_v46, 0.0 }
 0x111   : > { %v515_v52 = vadd.f32 %v3097_v50, %v3972_v32  ;;  %v509_v53 = vpop.f32.mrb[5].mxu0  ;;  %3388 = vmatpush3.bf16.msra.mxu1 %v3385_v45  ;;  %605 = vadd.xlane.f32.xlu0 %v604_v51  ;;  %v591_v54 = vmul.f32 %v3975_v34, %v3991_v47 }
 0x112   : > { %v510_v55 = vadd.f32 %v509_v53, %v3972_v32  ;;  %v3389_v56 = vpack.c.bf16 %v3991_v47, %v3994_v49  ;;  %v590_v63 = vmul.f32 %v3975_v34, %v3994_v49 }
 0x113   : > { %v4003_v57 = vmax.f32 %v515_v52, 0.0  ;;  %v613_v58 = vsel %vm374_vm0, %v591_v54, 0.0 }
 0x114   : > { %v4006_v59 = vmax.f32 %v510_v55, 0.0  ;;  %v3100_v60 = vpop.f32.mrb[6].mxu0  ;;  %3390 = vmatprep.subr.bf16.mxu1 %v3389_v56  ;;  %v610_v8 = vsel %vm374_vm0, %v590_v63, 0.0 }
 0x115   : > { %v525_v61 = vadd.f32 %v3100_v60, %v3972_v32  ;;  %v519_v62 = vpop.f32.mrb[7].mxu0  ;;  %3392 = vmatpush3.bf16.msra.mxu1 %v3389_v56  ;;  %614 = vadd.xlane.f32.xlu0 %v613_v58  ;;  %v593_v9 = vmul.f32 %v3975_v34, %v4003_v57 }
 0x116   : > { %v520_v0 = vadd.f32 %v519_v62, %v3972_v32  ;;  %v3393_v2 = vpack.c.bf16 %v4003_v57, %v4006_v59  ;;  %v592_v3 = vmul.f32 %v3975_v34, %v4006_v59 }
 0x117   : > { %v4016_v4 = vmax.f32 %v525_v61, 0.0  ;;  %v619_v37 = vsel %vm374_vm0, %v593_v9, 0.0 }
 0x118   : > { %v4018_v5 = vmax.f32 %v520_v0, 0.0  ;;  %3394 = vmatprep.subr.bf16.mxu1 %v3393_v2  ;;  %v616_v6 = vsel %vm374_vm0, %v592_v3, 0.0  ;;  %v3103_v7 = vpop.f32.mrb[8].mxu0 }
 0x119   : > { %617 = vadd.xlane.f32.xlu1 %v616_v6  ;;  %3396 = vmatpush3.bf16.msra.mxu1 %v3393_v2  ;;  %v535_v12 = vadd.f32 %v3103_v7, %v3972_v32  ;;  %v529_v13 = vpop.f32.mrb[9].mxu0  ;;  %v595_v40 = vmul.f32 %v3975_v34, %v4016_v4 }
 0x11a   : > { %611 = vadd.xlane.f32.xlu0 %v610_v8  ;;  %v3397_v27 = vpack.c.bf16 %v4016_v4, %v4018_v5  ;;  %v594_v29 = vmul.f32 %v3975_v34, %v4018_v5  ;;  %v530_v30 = vadd.f32 %v529_v13, %v3972_v32 }
 0x11b   : > { %v4031_v33 = vmax.f32 %v535_v12, 0.0  ;;  %v625_v51 = vsel %vm374_vm0, %v595_v40, 0.0 }
 0x11c   : > { %3398 = vmatprep.subr.bf16.mxu1 %v3397_v27  ;;  %v622_v31 = vsel %vm374_vm0, %v594_v29, 0.0  ;;  %v4033_v35 = vmax.f32 %v530_v30, 0.0  ;;  %v3106_v36 = vpop.f32.mrb[10].mxu0 }
 0x11d   : > { %623 = vadd.xlane.f32.xlu1 %v622_v31  ;;  %3400 = vmatpush3.bf16.msra.mxu1 %v3397_v27  ;;  %v545_v41 = vadd.f32 %v3106_v36, %v3972_v32  ;;  %v539_v42 = vpop.f32.mrb[11].mxu0  ;;  %v597_v58 = vmul.f32 %v3975_v34, %v4031_v33 }
 0x11e   : > { %620 = vadd.xlane.f32.xlu0 %v619_v37  ;;  %v540_v43 = vadd.f32 %v539_v42, %v3972_v32  ;;  %v3401_v44 = vpack.c.bf16 %v4031_v33, %v4033_v35  ;;  %v596_v45 = vmul.f32 %v3975_v34, %v4033_v35 }
 0x11f   : > { %v579_v46 = vmax.f32 %v545_v41, 0.0  ;;  %v631_v6 = vsel %vm374_vm0, %v597_v58, 0.0 }
 0x120   : > { %v578_v48 = vmax.f32 %v540_v43, 0.0  ;;  %v3109_v50 = vpop.f32.mrb[12].mxu0  ;;  %3402 = vmatprep.subr.bf16.mxu1 %v3401_v44  ;;  %v628_v56 = vsel %vm374_vm0, %v596_v45, 0.0 }
 0x121   : > { %v555_v52 = vadd.f32 %v3109_v50, %v3972_v32  ;;  %v549_v53 = vpop.f32.mrb[13].mxu0  ;;  %3404 = vmatpush3.bf16.msra.mxu1 %v3401_v44  ;;  %v599_v27 = vmul.f32 %v3975_v34, %v579_v46 }
 0x122   : > { %626 = vadd.xlane.f32.xlu0 %v625_v51  ;;  %v550_v54 = vadd.f32 %v549_v53, %v3972_v32  ;;  %v3405_v55 = vpack.c.bf16 %v579_v46, %v578_v48  ;;  %v598_v7 = vmul.f32 %v3975_v34, %v578_v48 }
 0x123   : > { %v581_v60 = vmax.f32 %v555_v52, 0.0 }
 0x124   : > { %v580_v61 = vmax.f32 %v550_v54, 0.0  ;;  %v3112_v62 = vpop.f32.mrb[14].mxu0  ;;  %3406 = vmatprep.subr.bf16.mxu1 %v3405_v55  ;;  %v634_v13 = vsel %vm374_vm0, %v598_v7, 0.0  ;;  %v335_v7 = vld [vmem:[%s4081_s9] sm:$0xff] }
 0x125   : > { %v565_v63 = vadd.f32 %v3112_v62, %v3972_v32  ;;  %v559_v0 = vpop.f32.mrb[15].mxu0  ;;  %3408 = vmatpush3.bf16.msra.mxu1 %v3405_v55  ;;  %v601_v31 = vmul.f32 %v3975_v34, %v581_v60 }
 0x126   : > { %629 = vadd.xlane.f32.xlu0 %v628_v56  ;;  %v560_v2 = vadd.f32 %v559_v0, %v3972_v32  ;;  %v3409_v3 = vpack.c.bf16 %v581_v60, %v580_v61  ;;  %v637_v32 = vsel %vm374_vm0, %v599_v27, 0.0  ;;  %v600_v29 = vmul.f32 %v3975_v34, %v580_v61 }
 0x127   : > { %v583_v8 = vmax.f32 %v565_v63, 0.0  ;;  %v643_v36 = vsel %vm374_vm0, %v601_v31, 0.0 }
 0x128   : > { %v582_v9 = vmax.f32 %v560_v2, 0.0  ;;  %3410 = vmatprep.subr.bf16.mxu1 %v3409_v3  ;;  %v640_v30 = vsel %vm374_vm0, %v600_v29, 0.0 }
 0x129   : > { %3412 = vmatpush3.bf16.msra.mxu1 %v3409_v3  ;;  %v603_v41 = vmul.f32 %v3975_v34, %v583_v8 }
 0x12a   : > { %632 = vadd.xlane.f32.xlu0 %v631_v6  ;;  %v3413_v12 = vpack.c.bf16 %v583_v8, %v582_v9  ;;  %v602_v37 = vmul.f32 %v3975_v34, %v582_v9  ;;  %v698_v34 = vpop.permute.xlu1 %697 }
 0x12b   : > { %v649_v42 = vsel %vm374_vm0, %v603_v41, 0.0 }
 0x12c   : > { %3414 = vmatprep.subr.bf16.mxu1 %v3413_v12  ;;  %v646_v40 = vsel %vm374_vm0, %v602_v37, 0.0 }
 0x12d   : > { %3416 = vmatpush3.bf16.msra.mxu1 %v3413_v12 }
 0x12e   : > { %635 = vadd.xlane.f32.xlu0 %v634_v13 }
 0x132   : > { %638 = vadd.xlane.f32.xlu0 %v637_v32 }
 0x136   : > { %641 = vadd.xlane.f32.xlu0 %v640_v30  ;;  %v4091_v30 = vld [vmem:[%s4081_s9 + $0x8] sm:$0xff] }
 0x13a   : > { %644 = vadd.xlane.f32.xlu0 %v643_v36 }
 0x13e   : > { %647 = vadd.xlane.f32.xlu0 %v646_v40 }
 0x142   : > { %650 = vadd.xlane.f32.xlu0 %v649_v42  ;;  %v4099_v42 = vld [vmem:[%s4081_s9 + $0x10] sm:$0xff] }
 0x150   : > { %652 = vxpose.xlu1.b32.start [1/16] (narrow) %v3981_v39, 32 }
 0x154   : > { %653 = vxpose.xlu1.b32.cont [2/16] (narrow) %v3979_v38, 32  ;;  %v702_v38 = vpop.permute.xlu1 %701 }
 0x158   : > { %654 = vxpose.xlu1.b32.cont [3/16] (narrow) %v3994_v49, 32 }
 0x15c   : > { %655 = vxpose.xlu1.b32.cont [4/16] (narrow) %v3991_v47, 32 }
 0x160   : > { %656 = vxpose.xlu1.b32.cont [5/16] (narrow) %v4006_v59, 32 }
 0x164   : > { %657 = vxpose.xlu1.b32.cont [6/16] (narrow) %v4003_v57, 32  ;;  %v690_v57 = vpop.permute.xlu0 %689 }
 0x168   : > { %658 = vxpose.xlu1.b32.cont [7/16] (narrow) %v4018_v5, 32  ;;  %v694_v43 = vpop.permute.xlu0 %693 }
 0x16c   : > { %659 = vxpose.xlu1.b32.cont [8/16] (narrow) %v4016_v4, 32 }
 0x170   : > { %660 = vxpose.xlu1.b32.cont [9/16] (narrow) %v4033_v35, 32 }
 0x174   : > { %661 = vxpose.xlu1.b32.cont [10/16] (narrow) %v4031_v33, 32 }
 0x178   : > { %662 = vxpose.xlu1.b32.cont [11/16] (narrow) %v578_v48, 32 }
 0x17c   : > { %663 = vxpose.xlu1.b32.cont [12/16] (narrow) %v579_v46, 32 }
 0x180   : > { %664 = vxpose.xlu1.b32.cont [13/16] (narrow) %v580_v61, 32 }
 0x184   : > { %665 = vxpose.xlu1.b32.cont [14/16] (narrow) %v581_v60, 32 }
 0x188   : > { %666 = vxpose.xlu1.b32.cont [15/16] (narrow) %v582_v9, 32 }
 0x18c   : > { %667 = vxpose.xlu1.b32.end [16/16] (narrow) %v583_v8, 32 }
 0x19d   : > { %v609_v39 = vpop.xlane.xlu1 %608 }
 0x19e   : > { %v606_v33 = vpop.xlane.xlu0 %605 }
 0x1a2   : > { %v615_v53 = vpop.xlane.xlu0 %614 }
 0x1a6   : > { %v618_v47 = vpop.xlane.xlu1 %617 }
 0x1a7   : > { %v612_v58 = vpop.xlane.xlu0 %611 }
 0x1aa   : > { %v624_v49 = vpop.xlane.xlu1 %623 }
 0x1ab   : > { %v621_v63 = vpop.xlane.xlu0 %620 }
 0x1af   : > { %v627_v12 = vpop.xlane.xlu0 %626 }
 0x1b3   : > { %v630_v31 = vpop.xlane.xlu0 %629 }
 0x1d0   : > { %v668_v59 = vpop.trf.xlu1 }
 0x1d1   : > { %v703_v35 = vmul.f32 %v690_v57, %v668_v59  ;;  %v633_v59 = vpop.xlane.xlu0 %632 }
 0x1d4   : > { %v669_v5 = vpop.trf.xlu1 }
 0x1d5   : > { %v704_v4 = vmul.f32 %v694_v43, %v669_v5  ;;  %v4107_v5 = vld [vmem:[%s4081_s9 + $0x18] sm:$0xff] }
 0x1d7   : > { %v707_v46 = vadd.f32 %v704_v4, %v703_v35  ;;  %v4115_v35 = vld [vmem:[%s4081_s9 + $0x20] sm:$0xff] }
 0x1d8   : > { %v670_v44 = vpop.trf.xlu1 }
 0x1d9   : > { %v705_v45 = vmul.f32 %v698_v34, %v670_v44 }
 0x1db   : > { %v708_v50 = vadd.f32 %v707_v46, %v705_v45  ;;  %v636_v45 = vpop.xlane.xlu0 %635 }
 0x1dc   : > { %v671_v48 = vpop.trf.xlu1 }
 0x1dd   : > { %v706_v51 = vmul.f32 %v702_v38, %v671_v48 }
 0x1df   : > { %v709_v52 = vadd.f32 %v708_v50, %v706_v51  ;;  %v4123_v51 = vld [vmem:[%s4081_s9 + $0x28] sm:$0xff] }
 0x1e1   : > { %v710_v54 = vrot.slane %v709_v52, 4 }
 0x1e3   : > { %v711_v55 = vadd.f32 %v710_v54, %v709_v52 }
 0x1e5   : > { %v712_v56 = vrot.slane %v711_v55, 2 }
 0x1e7   : > { %v713_v60 = vadd.f32 %v712_v56, %v711_v55  ;;  %v639_v55 = vpop.xlane.xlu0 %638  ;;  %v4131_v56 = vld [vmem:[%s4081_s9 + $0x30] sm:$0xff] }
 0x1e9   : > { %v714_v61 = vrot.slane %v713_v60, 1 }
 0x1eb   : > { %v4075_v62 = vadd.f32 %v714_v61, %v713_v60 }
 0x1ed   : > { %v716_v0 = vadd.f32 %v4075_v62, %v606_v33  ;;  %v717_v2 = vadd.f32 %v4075_v62, %v609_v39  ;;  %v718_v6 = vadd.f32 %v4075_v62, %v612_v58  ;;  %v719_v29 = vadd.f32 %v4075_v62, %v615_v53 }
 0x1ee   : > { %v720_v41 = vadd.f32 %v4075_v62, %v618_v47  ;;  %v721_v57 = vadd.f32 %v4075_v62, %v621_v63  ;;  %v722_v44 = vadd.f32 %v4075_v62, %v624_v49  ;;  %v723_v50 = vadd.f32 %v4075_v62, %v627_v12 }
 0x1ef   : > { %v732_v3 = vmul.f32 0.01, %v716_v0  ;;  %v733_v8 = vmul.f32 0.01, %v717_v2  ;;  %v734_v32 = vmul.f32 0.01, %v718_v6  ;;  %v725_v54 = vadd.f32 %v4075_v62, %v633_v59 }
 0x1f0   : > { %v735_v40 = vmul.f32 0.01, %v719_v29  ;;  %v736_v39 = vmul.f32 0.01, %v720_v41  ;;  %v737_v4 = vmul.f32 0.01, %v721_v57  ;;  %v724_v63 = vadd.f32 %v4075_v62, %v630_v31 }
 0x1f1   : > { %v748_v9 = vmax.f32 %v716_v0, %v732_v3  ;;  %v749_v27 = vmax.f32 %v717_v2, %v733_v8  ;;  %v750_v37 = vmax.f32 %v718_v6, %v734_v32  ;;  %v738_v48 = vmul.f32 0.01, %v722_v44  ;;  %v4139_v0 = vld [vmem:[%s4081_s9 + $0x38] sm:$0xff]  ;;  %v642_v2 = vpop.xlane.xlu0 %641 }
 0x1f2   : > { %v751_v38 = vmax.f32 %v719_v29, %v735_v40  ;;  %v752_v47 = vmax.f32 %v720_v41, %v736_v39  ;;  %v753_v46 = vmax.f32 %v721_v57, %v737_v4  ;;  %v739_v53 = vmul.f32 0.01, %v723_v50  ;;  %v4163_v57 = vld [vmem:[%s4081_s9 + $0x58] sm:$0xff] }
 0x1f3   : > { %v4087_v13 = vadd.f32 %v748_v9, %v335_v7  ;;  %v4095_v36 = vadd.f32 %v749_v27, %v4091_v30  ;;  %v4103_v34 = vadd.f32 %v750_v37, %v4099_v42  ;;  %v754_v49 = vmax.f32 %v722_v44, %v738_v48  ;;  %v4147_v9 = vld [vmem:[%s4081_s9 + $0x48] sm:$0xff]  ;;  %v4155_v37 = vld [vmem:[%s4081_s9 + $0x40] sm:$0xff] }
 0x1f4   : > { %v4111_v43 = vadd.f32 %v751_v38, %v4107_v5  ;;  %v4119_v33 = vadd.f32 %v752_v47, %v4115_v35  ;;  %v4127_v52 = vadd.f32 %v753_v46, %v4123_v51  ;;  %v755_v60 = vmax.f32 %v723_v50, %v739_v53  ;;  %v4171_v46 = vld [vmem:[%s4081_s9 + $0x50] sm:$0xff] }
 0x1f5   : > { %780 = vmax.xlane.f32.xlu0 %v4087_v13  ;;  %v4135_v58 = vadd.f32 %v754_v49, %v4131_v56  ;;  %v741_v61 = vmul.f32 0.01, %v725_v54  ;;  %v727_v3 = vadd.f32 %v4075_v62, %v639_v55  ;;  %v740_v8 = vmul.f32 0.01, %v724_v63  ;;  %v645_v31 = vpop.xlane.xlu0 %644  ;;  %v4179_v55 = vld [vmem:[%s4081_s9 + $0x68] sm:$0xff] }
 0x1f6   : > { %v4144_v6 = vadd.f32 %v755_v60, %v4139_v0  ;;  %v726_v29 = vadd.f32 %v4075_v62, %v636_v45  ;;  %v729_v40 = vadd.f32 %v4075_v62, %v645_v31  ;;  %v728_v47 = vadd.f32 %v4075_v62, %v642_v2  ;;  %v4201_v31 = vld [vmem:[%s4081_s9 + $0x78] sm:$0xff] }
 0x1f7   : > { %v757_v7 = vmax.f32 %v725_v54, %v741_v61  ;;  %v743_v12 = vmul.f32 0.01, %v727_v3  ;;  %v756_v32 = vmax.f32 %v724_v63, %v740_v8 }
 0x1f8   : > { %v742_v39 = vmul.f32 0.01, %v726_v29  ;;  %v745_v4 = vmul.f32 0.01, %v729_v40  ;;  %v744_v48 = vmul.f32 0.01, %v728_v47 }
 0x1f9   : > { %782 = vmax.xlane.f32.xlu0 %v4095_v36  ;;  %v4151_v27 = vadd.f32 %v757_v7, %v4147_v9  ;;  %v4160_v41 = vadd.f32 %v756_v32, %v4155_v37  ;;  %v759_v38 = vmax.f32 %v727_v3, %v743_v12  ;;  %v648_v59 = vpop.xlane.xlu0 %647  ;;  %v4187_v3 = vld [vmem:[%s4081_s9 + $0x60] sm:$0xff]  ;;  %v4194_v32 = vld [vmem:[%s4081_s9 + $0x70] sm:$0xff] }
 0x1fa   : > { %v758_v45 = vmax.f32 %v726_v29, %v742_v39  ;;  %v730_v50 = vadd.f32 %v4075_v62, %v648_v59  ;;  %v761_v53 = vmax.f32 %v729_v40, %v745_v4  ;;  %v760_v2 = vmax.f32 %v728_v47, %v744_v48 }
 0x1fb   : > { %v4168_v44 = vadd.f32 %v759_v38, %v4163_v57 }
 0x1fc   : > { %v4176_v49 = vadd.f32 %v758_v45, %v4171_v46  ;;  %v746_v60 = vmul.f32 0.01, %v730_v50  ;;  %v4184_v63 = vadd.f32 %v761_v53, %v4179_v55  ;;  %v4191_v8 = vadd.f32 %v760_v2, %v4187_v3 }
 0x1fd   : > { %784 = vmax.xlane.f32.xlu0 %v4103_v34  ;;  %v651_v54 = vpop.xlane.xlu0 %650 }
 0x1fe   : > { %v731_v61 = vadd.f32 %v4075_v62, %v651_v54  ;;  %v762_v12 = vmax.f32 %v730_v50, %v746_v60 }
 0x200   : > { %v747_v7 = vmul.f32 0.01, %v731_v61  ;;  %v4198_v29 = vadd.f32 %v762_v12, %v4194_v32 }
 0x201   : > { %786 = vmax.xlane.f32.xlu0 %v4111_v43 }
 0x202   : > { %v763_v62 = vmax.f32 %v731_v61, %v747_v7 }
 0x204   : > { %v4205_v40 = vadd.f32 %v763_v62, %v4201_v31 }
 0x205   : > { %788 = vmax.xlane.f32.xlu0 %v4119_v33 }
 0x209   : > { %790 = vmax.xlane.f32.xlu0 %v4127_v52 }
 0x20d   : > { %792 = vmax.xlane.f32.xlu0 %v4135_v58 }
 0x211   : > { %794 = vmax.xlane.f32.xlu0 %v4144_v6 }
 0x215   : > { %798 = vmax.xlane.f32.xlu0 %v4151_v27 }
 0x219   : > { %796 = vmax.xlane.f32.xlu0 %v4160_v41 }
 0x21d   : > { %802 = vmax.xlane.f32.xlu0 %v4168_v44 }
 0x221   : > { %800 = vmax.xlane.f32.xlu0 %v4176_v49 }
 0x225   : > { %806 = vmax.xlane.f32.xlu0 %v4184_v63 }
 0x229   : > { %804 = vmax.xlane.f32.xlu0 %v4191_v8 }
 0x22d   : > { %808 = vmax.xlane.f32.xlu0 %v4198_v29 }
 0x231   : > { %810 = vmax.xlane.f32.xlu0 %v4205_v40 }
 0x282   : > { %v781_v38 = vpop.xlane.xlu0 %780 }
 0x283   : > { %v812_v39 = vsub.f32 %v4087_v13, %v781_v38 }
 0x285   : > { %v828_v59 = vmul.f32 1.442695, %v812_v39 }
 0x286   : > { %v783_v47 = vpop.xlane.xlu0 %782 }
 0x287   : > { %3530 = vpow2.f32 %v828_v59  ;;  %v813_v4 = vsub.f32 %v4095_v36, %v783_v47 }
 0x289   : > { %v830_v45 = vmul.f32 1.442695, %v813_v4 }
 0x28a   : > { %v785_v48 = vpop.xlane.xlu0 %784 }
 0x28b   : > { %3532 = vpow2.f32 %v830_v45  ;;  %v814_v50 = vsub.f32 %v4103_v34, %v785_v48 }
 0x28d   : > { %v832_v53 = vmul.f32 1.442695, %v814_v50 }
 0x28e   : > { %v787_v54 = vpop.xlane.xlu0 %786 }
 0x28f   : > { %3534 = vpow2.f32 %v832_v53  ;;  %v815_v60 = vsub.f32 %v4111_v43, %v787_v54 }
 0x291   : > { %v4212_v61 = vpop.eup %3530  ;;  %v834_v2 = vmul.f32 1.442695, %v815_v60 }
 0x292   : > { %860 = vadd.xlane.f32.xlu0 %v4212_v61  ;;  %v789_v13 = vpop.xlane.xlu0 %788 }
 0x293   : > { %3536 = vpow2.f32 %v834_v2  ;;  %v816_v7 = vsub.f32 %v4119_v33, %v789_v13 }
 0x295   : > { %v4216_v36 = vpop.eup %3532  ;;  %v836_v12 = vmul.f32 1.442695, %v816_v7 }
 0x296   : > { %862 = vadd.xlane.f32.xlu0 %v4216_v36  ;;  %v791_v34 = vpop.xlane.xlu0 %790 }
 0x297   : > { %3538 = vpow2.f32 %v836_v12  ;;  %v817_v62 = vsub.f32 %v4127_v52, %v791_v34 }
 0x299   : > { %v4220_v38 = vpop.eup %3534  ;;  %v838_v43 = vmul.f32 1.442695, %v817_v62 }
 0x29a   : > { %864 = vadd.xlane.f32.xlu0 %v4220_v38  ;;  %v793_v39 = vpop.xlane.xlu0 %792 }
 0x29b   : > { %3540 = vpow2.f32 %v838_v43  ;;  %v818_v59 = vsub.f32 %v4135_v58, %v793_v39 }
 0x29d   : > { %v4224_v47 = vpop.eup %3536  ;;  %v840_v33 = vmul.f32 1.442695, %v818_v59 }
 0x29e   : > { %866 = vadd.xlane.f32.xlu0 %v4224_v47  ;;  %v795_v4 = vpop.xlane.xlu0 %794 }
 0x29f   : > { %3542 = vpow2.f32 %v840_v33  ;;  %v819_v45 = vsub.f32 %v4144_v6, %v795_v4 }
 0x2a1   : > { %v4228_v48 = vpop.eup %3538  ;;  %v842_v52 = vmul.f32 1.442695, %v819_v45 }
 0x2a2   : > { %868 = vadd.xlane.f32.xlu1 %v4228_v48  ;;  %v799_v50 = vpop.xlane.xlu0 %798 }
 0x2a3   : > { %3544 = vpow2.f32 %v842_v52  ;;  %v821_v53 = vsub.f32 %v4151_v27, %v799_v50 }
 0x2a5   : > { %v4232_v54 = vpop.eup %3540  ;;  %v846_v58 = vmul.f32 1.442695, %v821_v53 }
 0x2a6   : > { %870 = vadd.xlane.f32.xlu0 %v4232_v54  ;;  %v797_v60 = vpop.xlane.xlu0 %796 }
 0x2a7   : > { %3546 = vpow2.f32 %v846_v58  ;;  %v820_v2 = vsub.f32 %v4160_v41, %v797_v60 }
 0x2a9   : > { %v4236_v13 = vpop.eup %3542  ;;  %v844_v6 = vmul.f32 1.442695, %v820_v2 }
 0x2aa   : > { %872 = vadd.xlane.f32.xlu0 %v4236_v13  ;;  %v803_v7 = vpop.xlane.xlu0 %802 }
 0x2ab   : > { %3548 = vpow2.f32 %v844_v6  ;;  %v823_v12 = vsub.f32 %v4168_v44, %v803_v7 }
 0x2ad   : > { %v4240_v34 = vpop.eup %3544  ;;  %v850_v27 = vmul.f32 1.442695, %v823_v12 }
 0x2ae   : > { %874 = vadd.xlane.f32.xlu0 %v4240_v34  ;;  %v801_v62 = vpop.xlane.xlu0 %800 }
 0x2af   : > { %3550 = vpow2.f32 %v850_v27  ;;  %v822_v43 = vsub.f32 %v4176_v49, %v801_v62  ;;  %v355_v62 = vld [vmem:[#allocation2 + $0x20] sm:$0xff] }
 0x2b1   : > { %v4244_v39 = vpop.eup %3546  ;;  %v848_v41 = vmul.f32 1.442695, %v822_v43 }
 0x2b2   : > { %878 = vadd.xlane.f32.xlu0 %v4244_v39  ;;  %v807_v59 = vpop.xlane.xlu0 %806 }
 0x2b3   : > { %3552 = vpow2.f32 %v848_v41  ;;  %v825_v44 = vsub.f32 %v4184_v63, %v807_v59 }
 0x2b5   : > { %v4247_v33 = vpop.eup %3548  ;;  %v854_v49 = vmul.f32 1.442695, %v825_v44 }
 0x2b6   : > { %876 = vadd.xlane.f32.xlu0 %v4247_v33  ;;  %v805_v4 = vpop.xlane.xlu0 %804 }
 0x2b7   : > { %v824_v45 = vsub.f32 %v4191_v8, %v805_v4 }
 0x2b9   : > { %v4252_v52 = vpop.eup %3550  ;;  %v852_v50 = vmul.f32 1.442695, %v824_v45 }
 0x2ba   : > { %882 = vadd.xlane.f32.xlu0 %v4252_v52  ;;  %v809_v53 = vpop.xlane.xlu0 %808 }
 0x2bb   : > { %3554 = vpow2.f32 %v852_v50  ;;  %v826_v58 = vsub.f32 %v4198_v29, %v809_v53 }
 0x2bc   : > { %3556 = vpow2.f32 %v854_v49 }
 0x2bd   : > { %v4256_v60 = vpop.eup %3552  ;;  %v856_v2 = vmul.f32 1.442695, %v826_v58 }
 0x2be   : > { %880 = vadd.xlane.f32.xlu0 %v4256_v60  ;;  %v811_v63 = vpop.xlane.xlu0 %810 }
 0x2bf   : > { %3558 = vpow2.f32 %v856_v2  ;;  %v827_v8 = vsub.f32 %v4205_v40, %v811_v63  ;;  %v356_v40 = vld [vmem:[#allocation2 + $0x28] sm:$0xff] }
 0x2c0   : > { %v3417_v43 = vpack.c.bf16 %v356_v40, %v355_v62 }
 0x2c1   : > { %v858_v6 = vmul.f32 1.442695, %v827_v8 }
 0x2c2   : > { %3418 = vmatprep.subr.bf16.mxu0 %v3417_v43 }
 0x2c3   : > { %3560 = vpow2.f32 %v858_v6  ;;  %3420 = vmatpush3.bf16.msra.mxu0 %v3417_v43 }
 0x2c5   : > { %v4260_v7 = vpop.eup %3554 }
 0x2c6   : > { %884 = vadd.xlane.f32.xlu0 %v4260_v7  ;;  %v4263_v12 = vpop.eup %3556 }
 0x2c9   : > { %v4265_v27 = vpop.eup %3558 }
 0x2ca   : > { %886 = vadd.xlane.f32.xlu0 %v4263_v12  ;;  %888 = vadd.xlane.f32.xlu1 %v4265_v27 }
 0x2cd   : > { %v4269_v29 = vpop.eup %3560 }
 0x2ce   : > { %890 = vadd.xlane.f32.xlu0 %v4269_v29 }
 0x31f   : > { %v861_v41 = vpop.xlane.xlu0 %860 }
 0x320   : > { %3562 = vrcp.f32 %v861_v41 }
 0x323   : > { %v863_v59 = vpop.xlane.xlu0 %862 }
 0x324   : > { %3564 = vrcp.f32 %v863_v59 }
 0x327   : > { %v865_v44 = vpop.xlane.xlu0 %864 }
 0x328   : > { %3566 = vrcp.f32 %v865_v44 }
 0x32a   : > { %v3563_v4 = vpop.eup %3562 }
 0x32b   : > { %v867_v45 = vpop.xlane.xlu0 %866  ;;  %v893_v50 = vmul.f32 %v3563_v4, %v4212_v61 }
 0x32c   : > { %3568 = vrcp.f32 %v867_v45 }
 0x32d   : > { %3145 = vmatprep.mubr.f32.mxu1 %v893_v50 }
 0x32e   : > { %v3565_v49 = vpop.eup %3564 }
 0x32f   : > { %v869_v53 = vpop.xlane.xlu1 %868  ;;  %v895_v58 = vmul.f32 %v3565_v49, %v4216_v36 }
 0x330   : > { %3570 = vrcp.f32 %v869_v53 }
 0x331   : > { %3146 = vmatmul.mubr.f32.vlgmr.msra.gmra.mrb[0].mxu1 %v895_v58 }
 0x332   : > { %v3567_v2 = vpop.eup %3566 }
 0x333   : > { %v871_v63 = vpop.xlane.xlu0 %870  ;;  %v897_v8 = vmul.f32 %v3567_v2, %v4220_v38 }
 0x334   : > { %3572 = vrcp.f32 %v871_v63 }
 0x335   : > { %3148 = vmatprep.mubr.f32.mxu1 %v897_v8 }
 0x336   : > { %v3569_v6 = vpop.eup %3568 }
 0x337   : > { %v873_v62 = vpop.xlane.xlu0 %872  ;;  %v899_v40 = vmul.f32 %v3569_v6, %v4224_v47 }
 0x338   : > { %3574 = vrcp.f32 %v873_v62 }
 0x339   : > { %3149 = vmatmul.mubr.f32.gmra.mrb[2].mxu1 %v899_v40 }
 0x33a   : > { %v3571_v61 = vpop.eup %3570 }
 0x33b   : > { %v875_v43 = vpop.xlane.xlu0 %874  ;;  %v901_v41 = vmul.f32 %v3571_v61, %v4228_v48 }
 0x33c   : > { %3576 = vrcp.f32 %v875_v43 }
 0x33d   : > { %3151 = vmatprep.mubr.f32.mxu1 %v901_v41 }
 0x33e   : > { %v3573_v36 = vpop.eup %3572 }
 0x33f   : > { %v879_v59 = vpop.xlane.xlu0 %878  ;;  %v903_v44 = vmul.f32 %v3573_v36, %v4232_v54 }
 0x340   : > { %3578 = vrcp.f32 %v879_v59 }
 0x341   : > { %3152 = vmatmul.mubr.f32.gmra.mrb[4].mxu1 %v903_v44 }
 0x342   : > { %v3575_v38 = vpop.eup %3574 }
 0x343   : > { %v877_v4 = vpop.xlane.xlu0 %876  ;;  %v905_v45 = vmul.f32 %v3575_v38, %v4236_v13  ;;  %v358_v38 = vld [vmem:[#allocation2 + $0x38] sm:$0xff] }
 0x344   : > { %3580 = vrcp.f32 %v877_v4 }
 0x345   : > { %3154 = vmatprep.mubr.f32.mxu1 %v905_v45 }
 0x346   : > { %v3577_v47 = vpop.eup %3576 }
 0x347   : > { %v883_v50 = vpop.xlane.xlu0 %882  ;;  %v907_v49 = vmul.f32 %v3577_v47, %v4240_v34  ;;  %v3722_v47 = vld [vmem:[%s3882_s26] sm:$0xff] }
 0x348   : > { %3582 = vrcp.f32 %v883_v50 }
 0x349   : > { %3155 = vmatmul.mubr.f32.gmra.mrb[6].mxu1 %v907_v49 }
 0x34a   : > { %v3579_v53 = vpop.eup %3578 }
 0x34b   : > { %v881_v48 = vpop.xlane.xlu0 %880  ;;  %v911_v2 = vmul.f32 %v3579_v53, %v4244_v39 }
 0x34c   : > { %3584 = vrcp.f32 %v881_v48 }
 0x34e   : > { %v3581_v58 = vpop.eup %3580 }
 0x34f   : > { %v909_v54 = vmul.f32 %v3581_v58, %v4247_v33 }
 0x351   : > { %3157 = vmatprep.mubr.f32.mxu1 %v909_v54 }
 0x352   : > { %3158 = vmatmul.mubr.f32.gmra.mrb[8].mxu1 %v911_v2  ;;  %v3583_v13 = vpop.eup %3582 }
 0x353   : > { %v885_v63 = vpop.xlane.xlu0 %884  ;;  %v915_v40 = vmul.f32 %v3583_v13, %v4252_v52 }
 0x354   : > { %3586 = vrcp.f32 %v885_v63 }
 0x356   : > { %v3585_v8 = vpop.eup %3584 }
 0x357   : > { %v889_v6 = vpop.xlane.xlu1 %888  ;;  %v887_v62 = vpop.xlane.xlu0 %886  ;;  %v913_v34 = vmul.f32 %v3585_v8, %v4256_v60  ;;  %v357_v60 = vld [vmem:[#allocation2 + $0x30] sm:$0xff] }
 0x358   : > { %3588 = vrcp.f32 %v889_v6  ;;  %v3421_v4 = vpack.c.bf16 %v358_v38, %v357_v60 }
 0x359   : > { %3590 = vrcp.f32 %v887_v62  ;;  %3160 = vmatprep.mubr.f32.mxu1 %v913_v34 }
 0x35a   : > { %3161 = vmatmul.mubr.f32.gmra.mrb[10].mxu1 %v915_v40  ;;  %3422 = vmatprep.subr.bf16.mxu0 %v3421_v4  ;;  %v3723_v40 = vld [vmem:[%s3882_s26 + $0x60] sm:$0xff] }
 0x35b   : > { %v891_v61 = vpop.xlane.xlu0 %890  ;;  %3424 = vmatpush3.bf16.msra.mxu0 %v3421_v4 }
 0x35c   : > { %3592 = vrcp.f32 %v891_v61 }
 0x35e   : > { %v3587_v33 = vpop.eup %3586 }
 0x35f   : > { %v917_v39 = vmul.f32 %v3587_v33, %v4260_v7  ;;  %v1400_v7 = vsub.s32 3, %v3884_v1 }
 0x361   : > { %3163 = vmatprep.mubr.f32.mxu1 %v917_v39  ;;  %v1401_v45 = vrot.slane %v3892_v10, %v1400_v7 }
 0x362   : > { %v3589_v43 = vpop.eup %3588 }
 0x363   : > { %v3591_v41 = vpop.eup %3590  ;;  %v921_v36 = vmul.f32 %v3589_v43, %v4265_v27  ;;  %1403 = vbcast.lane.b32.xlu1 %v1401_v45, 256  ;;  %1407 = vbcast.lane.b32.xlu0 %v1401_v45, 264 }
 0x364   : > { %v919_v59 = vmul.f32 %v3591_v41, %v4263_v12  ;;  %v3725_v41 = vld [vmem:[%s3882_s26 + $0x78] sm:$0xff] }
 0x366   : > { %v3593_v44 = vpop.eup %3592  ;;  %3164 = vmatmul.mubr.f32.gmra.mrb[12].mxu1 %v919_v59  ;;  %v4373_v59 = vld [vmem:[%s5071_s4] sm:$0x3f] }
 0x367   : > { %3166 = vmatprep.mubr.f32.mxu1 %v921_v36  ;;  %v923_v52 = vmul.f32 %v3593_v44, %v4269_v29  ;;  %1411 = vbcast.lane.b32.xlu1 %v1401_v45, 272  ;;  %v4378_v44 = vrot.slane %v4373_v59, %v1300_v11 }
 0x36a   : > { %3167 = vmatmul.mubr.f32.gmra.mrb[14].mxu1 %v923_v52 }
 0x36b   : > { %1415 = vbcast.lane.b32.xlu1 %v1401_v45, 280 }
 0x404   : > { %v3147_v12 = vpop.f32.mrb[0].mxu1 }
 0x405   : > { %v990_v27 = vpop.f32.mrb[1].mxu1  ;;  %v4294_v29 = vadd.f32 %v3147_v12, %v3900_v14 }
 0x406   : > { %v4291_v50 = vadd.f32 %v3722_v47, %v990_v27 }
 0x408   : > { %3177 = vmatprep.mubr.msk.f32.mxu0 %vm374_vm0, %v4291_v50 }
 0x409   : > { %3178 = vmatmul.mubr.msk.f32.vlgmr.msra.gmra.mrb[16].mxu0 %vm374_vm0, %v4294_v29 }
 0x40c   : > { %v3150_v49 = vpop.f32.mrb[2].mxu1 }
 0x40d   : > { %v1000_v10 = vpop.f32.mrb[3].mxu1  ;;  %v4304_v53 = vadd.f32 %v3150_v49, %v3916_v18 }
 0x40e   : > { %v4301_v48 = vadd.f32 %v1000_v10, %v3909_v17 }
 0x410   : > { %3180 = vmatprep.mubr.msk.f32.mxu0 %vm374_vm0, %v4301_v48 }
 0x411   : > { %3181 = vmatmul.mubr.msk.f32.gmra.mrb[18].mxu0 %vm374_vm0, %v4304_v53 }
 0x414   : > { %v3153_v14 = vpop.f32.mrb[4].mxu1 }
 0x415   : > { %v1010_v58 = vpop.f32.mrb[5].mxu1  ;;  %v4314_v2 = vadd.f32 %v3153_v14, %v3926_v20 }
 0x416   : > { %v4311_v54 = vadd.f32 %v1010_v58, %v3919_v19 }
 0x418   : > { %3183 = vmatprep.mubr.msk.f32.mxu0 %vm374_vm0, %v4311_v54 }
 0x419   : > { %3184 = vmatmul.mubr.msk.f32.gmra.mrb[20].mxu0 %vm374_vm0, %v4314_v2 }
 0x41c   : > { %v3156_v17 = vpop.f32.mrb[6].mxu1 }
 0x41d   : > { %v1020_v18 = vpop.f32.mrb[7].mxu1  ;;  %v4324_v13 = vadd.f32 %v3156_v17, %v3936_v22 }
 0x41e   : > { %v4321_v63 = vadd.f32 %v1020_v18, %v3929_v21 }
 0x420   : > { %3186 = vmatprep.mubr.msk.f32.mxu0 %vm374_vm0, %v4321_v63 }
 0x421   : > { %3187 = vmatmul.mubr.msk.f32.gmra.mrb[22].mxu0 %vm374_vm0, %v4324_v13 }
 0x425   : > { %v3159_v19 = vpop.f32.mrb[8].mxu1 }
 0x426   : > { %v1030_v20 = vpop.f32.mrb[9].mxu1  ;;  %v4334_v6 = vadd.f32 %v3159_v19, %v3946_v24 }
 0x427   : > { %v4331_v8 = vadd.f32 %v1030_v20, %v3939_v23 }
 0x429   : > { %3189 = vmatprep.mubr.msk.f32.mxu0 %vm374_vm0, %v4331_v8 }
 0x42a   : > { %3190 = vmatmul.mubr.msk.f32.gmra.mrb[24].mxu0 %vm374_vm0, %v4334_v6 }
 0x42d   : > { %v3162_v21 = vpop.f32.mrb[10].mxu1 }
 0x42e   : > { %v1040_v22 = vpop.f32.mrb[11].mxu1  ;;  %v4344_v34 = vadd.f32 %v3162_v21, %v3956_v26  ;;  %v3724_v26 = vld [vmem:[%s3882_s26 + $0x70] sm:$0xff] }
 0x42f   : > { %v4341_v62 = vadd.f32 %v1040_v22, %v3949_v25 }
 0x431   : > { %3192 = vmatprep.mubr.msk.f32.mxu0 %vm374_vm0, %v4341_v62 }
 0x432   : > { %3193 = vmatmul.mubr.msk.f32.gmra.mrb[26].mxu0 %vm374_vm0, %v4344_v34 }
 0x439   : > { %v3165_v23 = vpop.f32.mrb[12].mxu1 }
 0x43a   : > { %v1050_v24 = vpop.f32.mrb[13].mxu1  ;;  %v4354_v33 = vadd.f32 %v3165_v23, %v3963_v28 }
 0x43b   : > { %v4351_v61 = vadd.f32 %v3723_v40, %v1050_v24 }
 0x43d   : > { %v3168_v39 = vpop.f32.mrb[14].mxu1  ;;  %3195 = vmatprep.mubr.msk.f32.mxu0 %vm374_vm0, %v4351_v61 }
 0x43e   : > { %v1060_v25 = vpop.f32.mrb[15].mxu1  ;;  %3196 = vmatmul.mubr.msk.f32.gmra.mrb[28].mxu0 %vm374_vm0, %v4354_v33  ;;  %v4364_v36 = vadd.f32 %v3725_v41, %v3168_v39 }
 0x43f   : > { %v4361_v43 = vadd.f32 %v3724_v26, %v1060_v25 }
 0x441   : > { %3198 = vmatprep.mubr.msk.f32.mxu0 %vm374_vm0, %v4361_v43 }
 0x442   : > { %3199 = vmatmul.mubr.msk.f32.gmra.mrb[30].mxu0 %vm374_vm0, %v4364_v36 }
 0x4dc   : > { %v3179_v28 = vpop.f32.mrb[16].mxu0 }
 0x4dd   : > { %v1209_v52 = vadd.f32 %v3179_v28, %v3902_v15  ;;  %v1203_v60 = vpop.f32.mrb[17].mxu0 }
 0x4de   : > { %v1204_v38 = vadd.f32 %v1203_v60, %v3902_v15 }
 0x4df   : > { %v4382_v4 = vmax.f32 %v1209_v52, 0.0 }
 0x4e0   : > { %v4384_v7 = vmax.f32 %v1204_v38, 0.0 }
 0x4e1   : > { %v1303_v45 = vmul.f32 %v4378_v44, %v4382_v4 }
 0x4e2   : > { %v3425_v12 = vpack.c.bf16 %v4382_v4, %v4384_v7  ;;  %v1302_v27 = vmul.f32 %v4378_v44, %v4384_v7 }
 0x4e3   : > { %v1321_v11 = vsel %vm374_vm0, %v1303_v45, 0.0 }
 0x4e4   : > { %1322 = vadd.xlane.f32.xlu1 %v1321_v11  ;;  %v3182_v47 = vpop.f32.mrb[18].mxu0  ;;  %3426 = vmatprep.subr.bf16.mxu1 %v3425_v12  ;;  %v1318_v49 = vsel %vm374_vm0, %v1302_v27, 0.0 }
 0x4e5   : > { %v1219_v10 = vadd.f32 %v3182_v47, %v3902_v15  ;;  %3428 = vmatpush3.bf16.msra.mxu1 %v3425_v12  ;;  %1319 = vadd.xlane.f32.xlu0 %v1318_v49  ;;  %v1213_v14 = vpop.f32.mrb[19].mxu0 }
 0x4e6   : > { %v1214_v58 = vadd.f32 %v1213_v14, %v3902_v15 }
 0x4e7   : > { %v4396_v17 = vmax.f32 %v1219_v10, 0.0 }
 0x4e8   : > { %v4398_v18 = vmax.f32 %v1214_v58, 0.0 }
 0x4e9   : > { %v1305_v19 = vmul.f32 %v4378_v44, %v4396_v17 }
 0x4ea   : > { %v3429_v20 = vpack.c.bf16 %v4396_v17, %v4398_v18  ;;  %v1304_v22 = vmul.f32 %v4378_v44, %v4398_v18 }
 0x4eb   : > { %v1327_v21 = vsel %vm374_vm0, %v1305_v19, 0.0 }
 0x4ec   : > { %1328 = vadd.xlane.f32.xlu0 %v1327_v21  ;;  %v3185_v23 = vpop.f32.mrb[20].mxu0  ;;  %3430 = vmatprep.subr.bf16.mxu1 %v3429_v20  ;;  %v1324_v26 = vsel %vm374_vm0, %v1304_v22, 0.0 }
 0x4ed   : > { %v1229_v24 = vadd.f32 %v3185_v23, %v3902_v15  ;;  %v1223_v40 = vpop.f32.mrb[21].mxu0  ;;  %3432 = vmatpush3.bf16.msra.mxu1 %v3429_v20 }
 0x4ee   : > { %v1224_v39 = vadd.f32 %v1223_v40, %v3902_v15 }
 0x4ef   : > { %v4409_v25 = vmax.f32 %v1229_v24, 0.0 }
 0x4f0   : > { %v4412_v41 = vmax.f32 %v1224_v39, 0.0  ;;  %1325 = vadd.xlane.f32.xlu0 %v1324_v26 }
 0x4f1   : > { %v1307_v28 = vmul.f32 %v4378_v44, %v4409_v25 }
 0x4f2   : > { %v3433_v52 = vpack.c.bf16 %v4409_v25, %v4412_v41  ;;  %v1306_v60 = vmul.f32 %v4378_v44, %v4412_v41 }
 0x4f3   : > { %v1333_v38 = vsel %vm374_vm0, %v1307_v28, 0.0 }
 0x4f4   : > { %1334 = vadd.xlane.f32.xlu0 %v1333_v38  ;;  %v3188_v45 = vpop.f32.mrb[22].mxu0  ;;  %3434 = vmatprep.subr.bf16.mxu1 %v3433_v52  ;;  %v1330_v12 = vsel %vm374_vm0, %v1306_v60, 0.0 }
 0x4f5   : > { %v1239_v27 = vadd.f32 %v3188_v45, %v3902_v15  ;;  %3436 = vmatpush3.bf16.msra.mxu1 %v3433_v52  ;;  %1331 = vadd.xlane.f32.xlu1 %v1330_v12  ;;  %v1233_v11 = vpop.f32.mrb[23].mxu0 }
 0x4f6   : > { %v1234_v47 = vadd.f32 %v1233_v11, %v3902_v15 }
 0x4f7   : > { %v4424_v49 = vmax.f32 %v1239_v27, 0.0 }
 0x4f8   : > { %v4426_v10 = vmax.f32 %v1234_v47, 0.0 }
 0x4f9   : > { %v1309_v14 = vmul.f32 %v4378_v44, %v4424_v49 }
 0x4fa   : > { %v3437_v58 = vpack.c.bf16 %v4424_v49, %v4426_v10  ;;  %v1308_v19 = vmul.f32 %v4378_v44, %v4426_v10 }
 0x4fb   : > { %v1339_v20 = vsel %vm374_vm0, %v1309_v14, 0.0 }
 0x4fc   : > { %1340 = vadd.xlane.f32.xlu0 %v1339_v20  ;;  %3438 = vmatprep.subr.bf16.mxu1 %v3437_v58  ;;  %v1336_v21 = vsel %vm374_vm0, %v1308_v19, 0.0 }
 0x4fd   : > { %3440 = vmatpush3.bf16.msra.mxu1 %v3437_v58  ;;  %1337 = vadd.xlane.f32.xlu1 %v1336_v21  ;;  %v3191_v22 = vpop.f32.mrb[24].mxu0 }
 0x4fe   : > { %v1249_v23 = vadd.f32 %v3191_v22, %v3902_v15  ;;  %v1243_v24 = vpop.f32.mrb[25].mxu0 }
 0x4ff   : > { %v1244_v40 = vadd.f32 %v1243_v24, %v3902_v15 }
 0x500   : > { %v4438_v39 = vmax.f32 %v1249_v23, 0.0 }
 0x501   : > { %v1290_v26 = vmax.f32 %v1244_v40, 0.0 }
 0x502   : > { %v1311_v45 = vmul.f32 %v4378_v44, %v4438_v39 }
 0x503   : > { %v3441_v28 = vpack.c.bf16 %v4438_v39, %v1290_v26  ;;  %v1310_v52 = vmul.f32 %v4378_v44, %v1290_v26 }
 0x504   : > { %v1345_v58 = vsel %vm374_vm0, %v1311_v45, 0.0 }
 0x505   : > { %v3194_v60 = vpop.f32.mrb[26].mxu0  ;;  %3442 = vmatprep.subr.bf16.mxu1 %v3441_v28  ;;  %v1342_v38 = vsel %vm374_vm0, %v1310_v52, 0.0 }
 0x506   : > { %v1259_v12 = vadd.f32 %v3194_v60, %v3902_v15  ;;  %3444 = vmatpush3.bf16.msra.mxu1 %v3441_v28  ;;  %1343 = vadd.xlane.f32.xlu0 %v1342_v38  ;;  %v1253_v27 = vpop.f32.mrb[27].mxu0 }
 0x507   : > { %v1254_v11 = vadd.f32 %v1253_v27, %v3902_v15 }
 0x508   : > { %v1293_v47 = vmax.f32 %v1259_v12, 0.0 }
 0x509   : > { %v1292_v14 = vmax.f32 %v1254_v11, 0.0 }
 0x50a   : > { %1346 = vadd.xlane.f32.xlu0 %v1345_v58  ;;  %v1313_v22 = vmul.f32 %v4378_v44, %v1293_v47 }
 0x50b   : > { %v3445_v19 = vpack.c.bf16 %v1293_v47, %v1292_v14  ;;  %v1312_v20 = vmul.f32 %v4378_v44, %v1292_v14 }
 0x50c   : > { %v1351_v24 = vsel %vm374_vm0, %v1313_v22, 0.0 }
 0x50d   : > { %3446 = vmatprep.subr.bf16.mxu1 %v3445_v19  ;;  %v1348_v21 = vsel %vm374_vm0, %v1312_v20, 0.0 }
 0x50e   : > { %3448 = vmatpush3.bf16.msra.mxu1 %v3445_v19  ;;  %1349 = vadd.xlane.f32.xlu0 %v1348_v21 }
 0x511   : > { %v3197_v23 = vpop.f32.mrb[28].mxu0 }
 0x512   : > { %v1269_v40 = vadd.f32 %v3197_v23, %v3902_v15  ;;  %v1263_v28 = vpop.f32.mrb[29].mxu0  ;;  %1352 = vadd.xlane.f32.xlu0 %v1351_v24 }
 0x513   : > { %v1264_v52 = vadd.f32 %v1263_v28, %v3902_v15 }
 0x514   : > { %v1295_v60 = vmax.f32 %v1269_v40, 0.0 }
 0x515   : > { %v1294_v38 = vmax.f32 %v1264_v52, 0.0  ;;  %v3200_v45 = vpop.f32.mrb[30].mxu0 }
 0x516   : > { %v1279_v12 = vadd.f32 %v3200_v45, %v3902_v15  ;;  %v1273_v27 = vpop.f32.mrb[31].mxu0  ;;  %v1315_v23 = vmul.f32 %v4378_v44, %v1295_v60 }
 0x517   : > { %v1274_v11 = vadd.f32 %v1273_v27, %v3902_v15  ;;  %v3449_v58 = vpack.c.bf16 %v1295_v60, %v1294_v38  ;;  %v1314_v19 = vmul.f32 %v4378_v44, %v1294_v38 }
 0x518   : > { %v1297_v20 = vmax.f32 %v1279_v12, 0.0  ;;  %v1357_v40 = vsel %vm374_vm0, %v1315_v23, 0.0 }
 0x519   : > { %v1296_v21 = vmax.f32 %v1274_v11, 0.0  ;;  %3450 = vmatprep.subr.bf16.mxu1 %v3449_v58  ;;  %v1354_v22 = vsel %vm374_vm0, %v1314_v19, 0.0 }
 0x51a   : > { %3452 = vmatpush3.bf16.msra.mxu1 %v3449_v58  ;;  %1355 = vadd.xlane.f32.xlu0 %v1354_v22  ;;  %v1317_v52 = vmul.f32 %v4378_v44, %v1297_v20 }
 0x51b   : > { %v3453_v24 = vpack.c.bf16 %v1297_v20, %v1296_v21  ;;  %v1316_v28 = vmul.f32 %v4378_v44, %v1296_v21  ;;  %v1404_v44 = vpop.permute.xlu1 %1403 }
 0x51c   : > { %v1363_v45 = vsel %vm374_vm0, %v1317_v52, 0.0 }
 0x51d   : > { %3454 = vmatprep.subr.bf16.mxu1 %v3453_v24  ;;  %v1360_v15 = vsel %vm374_vm0, %v1316_v28, 0.0 }
 0x51e   : > { %1358 = vadd.xlane.f32.xlu0 %v1357_v40  ;;  %3456 = vmatpush3.bf16.msra.mxu1 %v3453_v24 }
 0x522   : > { %1361 = vadd.xlane.f32.xlu0 %v1360_v15 }
 0x526   : > { %1364 = vadd.xlane.f32.xlu0 %v1363_v45 }
 0x530   : > { %1366 = vxpose.xlu1.b32.start [1/16] (narrow) %v4384_v7, 32 }
 0x534   : > { %1367 = vxpose.xlu1.b32.cont [2/16] (narrow) %v4382_v4, 32  ;;  %v1412_v4 = vpop.permute.xlu1 %1411 }
 0x538   : > { %1368 = vxpose.xlu1.b32.cont [3/16] (narrow) %v4398_v18, 32  ;;  %v1416_v7 = vpop.permute.xlu1 %1415 }
 0x53c   : > { %1369 = vxpose.xlu1.b32.cont [4/16] (narrow) %v4396_v17, 32 }
 0x540   : > { %1370 = vxpose.xlu1.b32.cont [5/16] (narrow) %v4412_v41, 32 }
 0x544   : > { %1371 = vxpose.xlu1.b32.cont [6/16] (narrow) %v4409_v25, 32 }
 0x548   : > { %1372 = vxpose.xlu1.b32.cont [7/16] (narrow) %v4426_v10, 32  ;;  %v1408_v10 = vpop.permute.xlu0 %1407 }
 0x54c   : > { %1373 = vxpose.xlu1.b32.cont [8/16] (narrow) %v4424_v49, 32 }
 0x550   : > { %1374 = vxpose.xlu1.b32.cont [9/16] (narrow) %v1290_v26, 32 }
 0x554   : > { %1375 = vxpose.xlu1.b32.cont [10/16] (narrow) %v4438_v39, 32 }
 0x558   : > { %1376 = vxpose.xlu1.b32.cont [11/16] (narrow) %v1292_v14, 32 }
 0x55c   : > { %1377 = vxpose.xlu1.b32.cont [12/16] (narrow) %v1293_v47, 32 }
 0x560   : > { %1378 = vxpose.xlu1.b32.cont [13/16] (narrow) %v1294_v38, 32 }
 0x564   : > { %1379 = vxpose.xlu1.b32.cont [14/16] (narrow) %v1295_v60, 32 }
 0x568   : > { %1380 = vxpose.xlu1.b32.cont [15/16] (narrow) %v1296_v21, 32 }
 0x56c   : > { %1381 = vxpose.xlu1.b32.end [16/16] (narrow) %v1297_v20, 32 }
 0x571   : > { %v1323_v17 = vpop.xlane.xlu1 %1322 }
 0x572   : > { %v1320_v19 = vpop.xlane.xlu0 %1319 }
 0x579   : > { %v1329_v22 = vpop.xlane.xlu0 %1328 }
 0x57d   : > { %v1326_v28 = vpop.xlane.xlu0 %1325 }
 0x582   : > { %v1332_v18 = vpop.xlane.xlu1 %1331 }
 0x58a   : > { %v1338_v41 = vpop.xlane.xlu1 %1337 }
 0x5b0   : > { %v1382_v25 = vpop.trf.xlu1 }
 0x5b1   : > { %v1417_v26 = vmul.f32 %v1404_v44, %v1382_v25  ;;  %v1335_v25 = vpop.xlane.xlu0 %1334 }
 0x5b4   : > { %v1383_v12 = vpop.trf.xlu1 }
 0x5b5   : > { %v1418_v27 = vmul.f32 %v1408_v10, %v1383_v12  ;;  %v4479_v12 = vld [vmem:[%s4081_s9] sm:$0xff] }
 0x5b7   : > { %v1421_v39 = vadd.f32 %v1418_v27, %v1417_v26 }
 0x5b8   : > { %v1384_v49 = vpop.trf.xlu1 }
 0x5b9   : > { %v1419_v11 = vmul.f32 %v1412_v4, %v1384_v49 }
 0x5bb   : > { %v1422_v47 = vadd.f32 %v1421_v39, %v1419_v11  ;;  %v1341_v11 = vpop.xlane.xlu0 %1340 }
 0x5bc   : > { %v1385_v14 = vpop.trf.xlu1 }
 0x5bd   : > { %v1420_v38 = vmul.f32 %v1416_v7, %v1385_v14 }
 0x5bf   : > { %v1423_v60 = vadd.f32 %v1422_v47, %v1420_v38  ;;  %v1344_v38 = vpop.xlane.xlu0 %1343 }
 0x5c1   : > { %v1424_v58 = vrot.slane %v1423_v60, 4 }
 0x5c3   : > { %v1425_v20 = vadd.f32 %v1424_v58, %v1423_v60 }
 0x5c5   : > { %v1426_v21 = vrot.slane %v1425_v20, 2 }
 0x5c7   : > { %v1427_v23 = vadd.f32 %v1426_v21, %v1425_v20 }
 0x5c9   : > { %v1428_v24 = vrot.slane %v1427_v23, 1 }
 0x5cb   : > { %v4473_v40 = vadd.f32 %v1428_v24, %v1427_v23 }
 0x5cd   : > { %v1430_v15 = vadd.f32 %v4473_v40, %v1320_v19  ;;  %v1431_v52 = vadd.f32 %v4473_v40, %v1323_v17  ;;  %v1432_v4 = vadd.f32 %v4473_v40, %v1326_v28  ;;  %v1433_v26 = vadd.f32 %v4473_v40, %v1329_v22 }
 0x5ce   : > { %v1434_v47 = vadd.f32 %v4473_v40, %v1332_v18  ;;  %v1435_v20 = vadd.f32 %v4473_v40, %v1335_v25  ;;  %v1436_v23 = vadd.f32 %v4473_v40, %v1338_v41  ;;  %v1347_v18 = vpop.xlane.xlu0 %1346  ;;  %v1438_v25 = vadd.f32 %v4473_v40, %v1344_v38 }
 0x5cf   : > { %v1446_v45 = vmul.f32 0.01, %v1430_v15  ;;  %v1447_v44 = vmul.f32 0.01, %v1431_v52  ;;  %v1448_v49 = vmul.f32 0.01, %v1432_v4  ;;  %v1439_v41 = vadd.f32 %v4473_v40, %v1347_v18 }
 0x5d0   : > { %v1449_v14 = vmul.f32 0.01, %v1433_v26  ;;  %v1450_v19 = vmul.f32 0.01, %v1434_v47  ;;  %v1451_v22 = vmul.f32 0.01, %v1435_v20 }
 0x5d1   : > { %v1462_v7 = vmax.f32 %v1430_v15, %v1446_v45  ;;  %v1463_v27 = vmax.f32 %v1431_v52, %v1447_v44  ;;  %v1464_v39 = vmax.f32 %v1432_v4, %v1448_v49  ;;  %v1452_v28 = vmul.f32 0.01, %v1436_v23 }
 0x5d2   : > { %v1465_v58 = vmax.f32 %v1433_v26, %v1449_v14  ;;  %v1437_v15 = vadd.f32 %v4473_v40, %v1341_v11  ;;  %v1350_v52 = vpop.xlane.xlu0 %1349  ;;  %v1454_v26 = vmul.f32 0.01, %v1438_v25 }
 0x5d3   : > { %v4482_v10 = vadd.f32 %v4479_v12, %v1462_v7  ;;  %v4487_v17 = vadd.f32 %v1463_v27, %v4091_v30  ;;  %v4492_v60 = vadd.f32 %v1464_v39, %v4099_v42  ;;  %v1466_v30 = vmax.f32 %v1434_v47, %v1450_v19 }
 0x5d4   : > { %v4497_v21 = vadd.f32 %v1465_v58, %v4107_v5  ;;  %v1467_v42 = vmax.f32 %v1435_v20, %v1451_v22  ;;  %v1468_v45 = vmax.f32 %v1436_v23, %v1452_v28  ;;  %v1453_v44 = vmul.f32 0.01, %v1437_v15 }
 0x5d5   : > { %1494 = vmax.xlane.f32.xlu0 %v4482_v10  ;;  %v4502_v24 = vadd.f32 %v1466_v30, %v4115_v35  ;;  %v1455_v7 = vmul.f32 0.01, %v1439_v41  ;;  %v1470_v14 = vmax.f32 %v1438_v25, %v1454_v26  ;;  %v1440_v38 = vadd.f32 %v4473_v40, %v1350_v52 }
 0x5d6   : > { %v4507_v5 = vadd.f32 %v1467_v42, %v4123_v51  ;;  %v4512_v4 = vadd.f32 %v1468_v45, %v4131_v56  ;;  %v1469_v35 = vmax.f32 %v1437_v15, %v1453_v44  ;;  %v1353_v27 = vpop.xlane.xlu0 %1352 }
 0x5d7   : > { %v1471_v51 = vmax.f32 %v1439_v41, %v1455_v7  ;;  %v1441_v11 = vadd.f32 %v4473_v40, %v1353_v27  ;;  %v1456_v20 = vmul.f32 0.01, %v1440_v38 }
 0x5d8   : > { %v4517_v49 = vadd.f32 %v1469_v35, %v4139_v0  ;;  %v4527_v0 = vadd.f32 %v1470_v14, %v4155_v37 }
 0x5d9   : > { %1496 = vmax.xlane.f32.xlu0 %v4487_v17  ;;  %v4522_v56 = vadd.f32 %v1471_v51, %v4147_v9  ;;  %v1457_v47 = vmul.f32 0.01, %v1441_v11  ;;  %v1472_v9 = vmax.f32 %v1440_v38, %v1456_v20 }
 0x5da   : > { %v1356_v39 = vpop.xlane.xlu0 %1355 }
 0x5db   : > { %v1473_v19 = vmax.f32 %v1441_v11, %v1457_v47  ;;  %v1442_v18 = vadd.f32 %v4473_v40, %v1356_v39  ;;  %v4537_v28 = vadd.f32 %v1472_v9, %v4171_v46 }
 0x5dd   : > { %1498 = vmax.xlane.f32.xlu0 %v4492_v60  ;;  %v4532_v22 = vadd.f32 %v1473_v19, %v4163_v57  ;;  %v1458_v15 = vmul.f32 0.01, %v1442_v18 }
 0x5de   : > { %v1359_v58 = vpop.xlane.xlu0 %1358 }
 0x5df   : > { %v1443_v30 = vadd.f32 %v4473_v40, %v1359_v58  ;;  %v1474_v44 = vmax.f32 %v1442_v18, %v1458_v15 }
 0x5e1   : > { %1500 = vmax.xlane.f32.xlu0 %v4497_v21  ;;  %v1459_v23 = vmul.f32 0.01, %v1443_v30  ;;  %v4547_v7 = vadd.f32 %v1474_v44, %v4187_v3 }
 0x5e2   : > { %v1362_v42 = vpop.xlane.xlu0 %1361 }
 0x5e3   : > { %v1475_v37 = vmax.f32 %v1443_v30, %v1459_v23  ;;  %v1444_v52 = vadd.f32 %v4473_v40, %v1362_v42 }
 0x5e5   : > { %1502 = vmax.xlane.f32.xlu0 %v4502_v24  ;;  %v4542_v57 = vadd.f32 %v1475_v37, %v4179_v55  ;;  %v1460_v41 = vmul.f32 0.01, %v1444_v52 }
 0x5e6   : > { %v1365_v45 = vpop.xlane.xlu0 %1364 }
 0x5e7   : > { %v1445_v35 = vadd.f32 %v4473_v40, %v1365_v45  ;;  %v1476_v46 = vmax.f32 %v1444_v52, %v1460_v41 }
 0x5e9   : > { %1504 = vmax.xlane.f32.xlu0 %v4507_v5  ;;  %v1461_v25 = vmul.f32 0.01, %v1445_v35  ;;  %v4551_v27 = vadd.f32 %v1476_v46, %v4194_v32 }
 0x5eb   : > { %v1477_v51 = vmax.f32 %v1445_v35, %v1461_v25 }
 0x5ed   : > { %1506 = vmax.xlane.f32.xlu0 %v4512_v4  ;;  %v4555_v55 = vadd.f32 %v1477_v51, %v4201_v31 }
 0x5f1   : > { %1508 = vmax.xlane.f32.xlu0 %v4517_v49 }
 0x5f5   : > { %1512 = vmax.xlane.f32.xlu0 %v4522_v56 }
 0x5f9   : > { %1510 = vmax.xlane.f32.xlu0 %v4527_v0 }
 0x5fd   : > { %1516 = vmax.xlane.f32.xlu0 %v4532_v22 }
 0x601   : > { %1514 = vmax.xlane.f32.xlu0 %v4537_v28 }
 0x605   : > { %1520 = vmax.xlane.f32.xlu0 %v4542_v57 }
 0x609   : > { %1518 = vmax.xlane.f32.xlu0 %v4547_v7 }
 0x60d   : > { %1522 = vmax.xlane.f32.xlu0 %v4551_v27 }
 0x611   : > { %1524 = vmax.xlane.f32.xlu0 %v4555_v55 }
 0x662   : > { %v1495_v40 = vpop.xlane.xlu0 %1494 }
 0x663   : > { %v1526_v26 = vsub.f32 %v4482_v10, %v1495_v40 }
 0x665   : > { %v1542_v3 = vmul.f32 1.442695, %v1526_v26 }
 0x666   : > { %v1497_v11 = vpop.xlane.xlu0 %1496 }
 0x667   : > { %3594 = vpow2.f32 %v1542_v3  ;;  %v1527_v39 = vsub.f32 %v4487_v17, %v1497_v11 }
 0x669   : > { %v1544_v14 = vmul.f32 1.442695, %v1527_v39 }
 0x66a   : > { %v1499_v47 = vpop.xlane.xlu0 %1498 }
 0x66b   : > { %3596 = vpow2.f32 %v1544_v14  ;;  %v1528_v32 = vsub.f32 %v4492_v60, %v1499_v47 }
 0x66d   : > { %v1546_v38 = vmul.f32 1.442695, %v1528_v32 }
 0x66e   : > { %v1501_v58 = vpop.xlane.xlu0 %1500 }
 0x66f   : > { %3598 = vpow2.f32 %v1546_v38  ;;  %v1529_v31 = vsub.f32 %v4497_v21, %v1501_v58 }
 0x671   : > { %v4562_v19 = vpop.eup %3594  ;;  %v1548_v20 = vmul.f32 1.442695, %v1529_v31 }
 0x672   : > { %1574 = vadd.xlane.f32.xlu0 %v4562_v19  ;;  %v1503_v10 = vpop.xlane.xlu0 %1502 }
 0x673   : > { %3600 = vpow2.f32 %v1548_v20  ;;  %v1530_v30 = vsub.f32 %v4502_v24, %v1503_v10 }
 0x675   : > { %v4566_v17 = vpop.eup %3596  ;;  %v1550_v9 = vmul.f32 1.442695, %v1530_v30 }
 0x676   : > { %1576 = vadd.xlane.f32.xlu0 %v4566_v17  ;;  %v1505_v60 = vpop.xlane.xlu0 %1504 }
 0x677   : > { %3602 = vpow2.f32 %v1550_v9  ;;  %v1531_v23 = vsub.f32 %v4507_v5, %v1505_v60 }
 0x679   : > { %v4570_v18 = vpop.eup %3598  ;;  %v1552_v21 = vmul.f32 1.442695, %v1531_v23 }
 0x67a   : > { %1578 = vadd.xlane.f32.xlu0 %v4570_v18  ;;  %v1507_v42 = vpop.xlane.xlu0 %1506 }
 0x67b   : > { %3604 = vpow2.f32 %v1552_v21  ;;  %v1532_v37 = vsub.f32 %v4512_v4, %v1507_v42 }
 0x67d   : > { %v4574_v15 = vpop.eup %3600  ;;  %v1554_v24 = vmul.f32 1.442695, %v1532_v37 }
 0x67e   : > { %1580 = vadd.xlane.f32.xlu0 %v4574_v15  ;;  %v1509_v52 = vpop.xlane.xlu0 %1508 }
 0x67f   : > { %3606 = vpow2.f32 %v1554_v24  ;;  %v1533_v45 = vsub.f32 %v4517_v49, %v1509_v52  ;;  %v359_v52 = vld [vmem:[#allocation2 + $0x40] sm:$0xff] }
 0x681   : > { %v4578_v44 = vpop.eup %3602  ;;  %v1556_v5 = vmul.f32 1.442695, %v1533_v45 }
 0x682   : > { %1582 = vadd.xlane.f32.xlu1 %v4578_v44  ;;  %v1513_v41 = vpop.xlane.xlu0 %1512 }
 0x683   : > { %3608 = vpow2.f32 %v1556_v5  ;;  %v1535_v35 = vsub.f32 %v4522_v56, %v1513_v41 }
 0x685   : > { %v4582_v46 = vpop.eup %3604  ;;  %v1560_v4 = vmul.f32 1.442695, %v1535_v35 }
 0x686   : > { %1584 = vadd.xlane.f32.xlu0 %v4582_v46  ;;  %v1511_v25 = vpop.xlane.xlu0 %1510 }
 0x687   : > { %3610 = vpow2.f32 %v1560_v4  ;;  %v1534_v51 = vsub.f32 %v4527_v0, %v1511_v25 }
 0x689   : > { %v4586_v40 = vpop.eup %3606  ;;  %v1558_v49 = vmul.f32 1.442695, %v1534_v51 }
 0x68a   : > { %1586 = vadd.xlane.f32.xlu0 %v4586_v40  ;;  %v1517_v26 = vpop.xlane.xlu0 %1516 }
 0x68b   : > { %3612 = vpow2.f32 %v1558_v49  ;;  %v1537_v3 = vsub.f32 %v4532_v22, %v1517_v26 }
 0x68d   : > { %v4590_v11 = vpop.eup %3608  ;;  %v1564_v56 = vmul.f32 1.442695, %v1537_v3 }
 0x68e   : > { %1588 = vadd.xlane.f32.xlu0 %v4590_v11  ;;  %v1515_v39 = vpop.xlane.xlu0 %1514 }
 0x68f   : > { %3614 = vpow2.f32 %v1564_v56  ;;  %v1536_v14 = vsub.f32 %v4537_v28, %v1515_v39 }
 0x691   : > { %v4594_v47 = vpop.eup %3610  ;;  %v1562_v0 = vmul.f32 1.442695, %v1536_v14 }
 0x692   : > { %1592 = vadd.xlane.f32.xlu0 %v4594_v47  ;;  %v1521_v32 = vpop.xlane.xlu0 %1520 }
 0x693   : > { %3616 = vpow2.f32 %v1562_v0  ;;  %v1539_v38 = vsub.f32 %v4542_v57, %v1521_v32 }
 0x695   : > { %v4598_v58 = vpop.eup %3612  ;;  %v1568_v22 = vmul.f32 1.442695, %v1539_v38 }
 0x696   : > { %1590 = vadd.xlane.f32.xlu0 %v4598_v58  ;;  %v1519_v31 = vpop.xlane.xlu0 %1518 }
 0x697   : > { %3618 = vpow2.f32 %v1568_v22  ;;  %v1538_v20 = vsub.f32 %v4547_v7, %v1519_v31 }
 0x699   : > { %v4602_v10 = vpop.eup %3614  ;;  %v1566_v28 = vmul.f32 1.442695, %v1538_v20 }
 0x69a   : > { %1596 = vadd.xlane.f32.xlu0 %v4602_v10  ;;  %v1523_v30 = vpop.xlane.xlu0 %1522 }
 0x69b   : > { %3620 = vpow2.f32 %v1566_v28  ;;  %v1540_v9 = vsub.f32 %v4551_v27, %v1523_v30 }
 0x69d   : > { %v4606_v60 = vpop.eup %3616  ;;  %v1570_v57 = vmul.f32 1.442695, %v1540_v9 }
 0x69e   : > { %1594 = vadd.xlane.f32.xlu0 %v4606_v60  ;;  %v1525_v23 = vpop.xlane.xlu0 %1524 }
 0x69f   : > { %3622 = vpow2.f32 %v1570_v57  ;;  %v1541_v21 = vsub.f32 %v4555_v55, %v1525_v23  ;;  %v360_v55 = vld [vmem:[#allocation2 + $0x48] sm:$0xff] }
 0x6a0   : > { %v3457_v45 = vpack.c.bf16 %v360_v55, %v359_v52 }
 0x6a1   : > { %v4610_v42 = vpop.eup %3618  ;;  %v1572_v7 = vmul.f32 1.442695, %v1541_v21 }
 0x6a2   : > { %1600 = vadd.xlane.f32.xlu0 %v4610_v42  ;;  %3458 = vmatprep.subr.bf16.mxu0 %v3457_v45 }
 0x6a3   : > { %3624 = vpow2.f32 %v1572_v7  ;;  %3460 = vmatpush3.bf16.msra.mxu0 %v3457_v45 }
 0x6a5   : > { %v4613_v37 = vpop.eup %3620 }
 0x6a6   : > { %1598 = vadd.xlane.f32.xlu0 %v4613_v37 }
 0x6a9   : > { %v4616_v27 = vpop.eup %3622 }
 0x6aa   : > { %1602 = vadd.xlane.f32.xlu0 %v4616_v27 }
 0x6ad   : > { %v4619_v24 = vpop.eup %3624 }
 0x6ae   : > { %1604 = vadd.xlane.f32.xlu1 %v4619_v24 }
 0x6ff   : > { %v1575_v5 = vpop.xlane.xlu0 %1574 }
 0x700   : > { %3626 = vrcp.f32 %v1575_v5 }
 0x703   : > { %v1577_v41 = vpop.xlane.xlu0 %1576 }
 0x704   : > { %3628 = vrcp.f32 %v1577_v41 }
 0x707   : > { %v1579_v35 = vpop.xlane.xlu0 %1578 }
 0x708   : > { %3630 = vrcp.f32 %v1579_v35 }
 0x70a   : > { %v3627_v4 = vpop.eup %3626 }
 0x70b   : > { %v1581_v25 = vpop.xlane.xlu0 %1580  ;;  %v1607_v51 = vmul.f32 %v3627_v4, %v4562_v19 }
 0x70c   : > { %3632 = vrcp.f32 %v1581_v25 }
 0x70d   : > { %3233 = vmatprep.mubr.f32.mxu1 %v1607_v51 }
 0x70e   : > { %v3629_v49 = vpop.eup %3628 }
 0x70f   : > { %v1609_v26 = vmul.f32 %v3629_v49, %v4566_v17  ;;  %v1583_v3 = vpop.xlane.xlu1 %1582 }
 0x710   : > { %3634 = vrcp.f32 %v1583_v3 }
 0x711   : > { %3234 = vmatmul.mubr.f32.vlgmr.msra.gmra.mrb[16].mxu1 %v1609_v26 }
 0x712   : > { %v3631_v56 = vpop.eup %3630 }
 0x713   : > { %v1585_v39 = vpop.xlane.xlu0 %1584  ;;  %v1611_v14 = vmul.f32 %v3631_v56, %v4570_v18  ;;  %v362_v56 = vld [vmem:[#allocation2 + $0x58] sm:$0xff] }
 0x714   : > { %3636 = vrcp.f32 %v1585_v39 }
 0x715   : > { %3236 = vmatprep.mubr.f32.mxu1 %v1611_v14  ;;  %v2114_v14 = vsub.s32 5, %v3884_v1 }
 0x716   : > { %v3633_v0 = vpop.eup %3632 }
 0x717   : > { %v1587_v32 = vpop.xlane.xlu0 %1586  ;;  %v1613_v38 = vmul.f32 %v3633_v0, %v4574_v15 }
 0x718   : > { %3638 = vrcp.f32 %v1587_v32 }
 0x719   : > { %3237 = vmatmul.mubr.f32.gmra.mrb[18].mxu1 %v1613_v38 }
 0x71a   : > { %v3635_v19 = vpop.eup %3634 }
 0x71b   : > { %v1589_v22 = vpop.xlane.xlu0 %1588  ;;  %v1615_v31 = vmul.f32 %v3635_v19, %v4578_v44 }
 0x71c   : > { %3640 = vrcp.f32 %v1589_v22 }
 0x71d   : > { %3239 = vmatprep.mubr.f32.mxu1 %v1615_v31 }
 0x71e   : > { %v3637_v17 = vpop.eup %3636 }
 0x71f   : > { %v1593_v20 = vpop.xlane.xlu0 %1592  ;;  %v1617_v28 = vmul.f32 %v3637_v17, %v4582_v46 }
 0x720   : > { %3642 = vrcp.f32 %v1593_v20 }
 0x721   : > { %3240 = vmatmul.mubr.f32.gmra.mrb[20].mxu1 %v1617_v28 }
 0x722   : > { %v3639_v18 = vpop.eup %3638 }
 0x723   : > { %v1591_v30 = vpop.xlane.xlu0 %1590  ;;  %v1619_v9 = vmul.f32 %v3639_v18, %v4586_v40 }
 0x724   : > { %3644 = vrcp.f32 %v1591_v30 }
 0x725   : > { %3242 = vmatprep.mubr.f32.mxu1 %v1619_v9 }
 0x726   : > { %v3641_v15 = vpop.eup %3640 }
 0x727   : > { %v1597_v57 = vpop.xlane.xlu0 %1596  ;;  %v1621_v23 = vmul.f32 %v3641_v15, %v4590_v11 }
 0x728   : > { %3646 = vrcp.f32 %v1597_v57 }
 0x729   : > { %3243 = vmatmul.mubr.f32.gmra.mrb[22].mxu1 %v1621_v23 }
 0x72a   : > { %v3643_v21 = vpop.eup %3642 }
 0x72b   : > { %v1595_v44 = vpop.xlane.xlu0 %1594  ;;  %v1625_v55 = vmul.f32 %v3643_v21, %v4594_v47 }
 0x72c   : > { %3648 = vrcp.f32 %v1595_v44 }
 0x72e   : > { %v3645_v7 = vpop.eup %3644 }
 0x72f   : > { %v1601_v52 = vpop.xlane.xlu0 %1600  ;;  %v1623_v46 = vmul.f32 %v3645_v7, %v4598_v58 }
 0x730   : > { %3650 = vrcp.f32 %v1601_v52 }
 0x731   : > { %3245 = vmatprep.mubr.f32.mxu1 %v1623_v46 }
 0x732   : > { %3246 = vmatmul.mubr.f32.gmra.mrb[24].mxu1 %v1625_v55  ;;  %v3647_v45 = vpop.eup %3646 }
 0x733   : > { %v1599_v40 = vpop.xlane.xlu0 %1598  ;;  %v1629_v35 = vmul.f32 %v3647_v45, %v4602_v10  ;;  %v361_v10 = vld [vmem:[#allocation2 + $0x50] sm:$0xff] }
 0x734   : > { %3652 = vrcp.f32 %v1599_v40  ;;  %v3461_v39 = vpack.c.bf16 %v362_v56, %v361_v10 }
 0x736   : > { %v3649_v5 = vpop.eup %3648  ;;  %3462 = vmatprep.subr.bf16.mxu0 %v3461_v39 }
 0x737   : > { %v1603_v41 = vpop.xlane.xlu0 %1602  ;;  %v1627_v11 = vmul.f32 %v3649_v5, %v4606_v60  ;;  %3464 = vmatpush3.bf16.msra.mxu0 %v3461_v39 }
 0x738   : > { %3654 = vrcp.f32 %v1603_v41 }
 0x739   : > { %3248 = vmatprep.mubr.f32.mxu1 %v1627_v11 }
 0x73a   : > { %3249 = vmatmul.mubr.f32.gmra.mrb[26].mxu1 %v1629_v35  ;;  %v3651_v58 = vpop.eup %3650 }
 0x73b   : > { %v1605_v4 = vpop.xlane.xlu1 %1604  ;;  %v1633_v51 = vmul.f32 %v3651_v58, %v4610_v42 }
 0x73c   : > { %3656 = vrcp.f32 %v1605_v4 }
 0x73e   : > { %v3653_v25 = vpop.eup %3652 }
 0x73f   : > { %v1631_v47 = vmul.f32 %v3653_v25, %v4613_v37  ;;  %v2115_v37 = vrot.slane %v4373_v59, %v2114_v14 }
 0x741   : > { %3251 = vmatprep.mubr.f32.mxu1 %v1631_v47  ;;  %2121 = vbcast.lane.b32.xlu1 %v2115_v37, 264 }
 0x742   : > { %v3655_v49 = vpop.eup %3654  ;;  %3252 = vmatmul.mubr.f32.gmra.mrb[28].mxu1 %v1633_v51  ;;  %2117 = vbcast.lane.b32.xlu0 %v2115_v37, 256 }
 0x743   : > { %v1635_v26 = vmul.f32 %v3655_v49, %v4616_v27 }
 0x745   : > { %3254 = vmatprep.mubr.f32.mxu1 %v1635_v26  ;;  %2125 = vbcast.lane.b32.xlu1 %v2115_v37, 272 }
 0x746   : > { %v3657_v60 = vpop.eup %3656  ;;  %2129 = vbcast.lane.b32.xlu0 %v2115_v37, 280 }
 0x747   : > { %v1637_v3 = vmul.f32 %v3657_v60, %v4619_v24 }
 0x749   : > { %3255 = vmatmul.mubr.f32.gmra.mrb[30].mxu1 %v1637_v3 }
 0x7e4   : > { %v3235_v42 = vpop.f32.mrb[16].mxu1 }
 0x7e5   : > { %v1704_v27 = vpop.f32.mrb[17].mxu1  ;;  %v4644_v24 = vadd.f32 %v3235_v42, %v4294_v29 }
 0x7e6   : > { %v4641_v0 = vadd.f32 %v1704_v27, %v4291_v50 }
 0x7e8   : > { %3265 = vmatprep.mubr.msk.f32.mxu0 %vm374_vm0, %v4641_v0 }
 0x7e9   : > { %3266 = vmatmul.mubr.msk.f32.vlgmr.msra.gmra.mrb[32].mxu0 %vm374_vm0, %v4644_v24 }
 0x7ec   : > { %v3238_v32 = vpop.f32.mrb[18].mxu1 }
 0x7ed   : > { %v1714_v38 = vpop.f32.mrb[19].mxu1  ;;  %v4654_v22 = vadd.f32 %v3238_v32, %v4304_v53 }
 0x7ee   : > { %v4651_v19 = vadd.f32 %v1714_v38, %v4301_v48 }
 0x7f0   : > { %3268 = vmatprep.mubr.msk.f32.mxu0 %vm374_vm0, %v4651_v19 }
 0x7f1   : > { %3269 = vmatmul.mubr.msk.f32.gmra.mrb[34].mxu0 %vm374_vm0, %v4654_v22 }
 0x7f4   : > { %v3241_v50 = vpop.f32.mrb[20].mxu1 }
 0x7f5   : > { %v1724_v29 = vpop.f32.mrb[21].mxu1  ;;  %v4664_v17 = vadd.f32 %v3241_v50, %v4314_v2 }
 0x7f6   : > { %v4661_v31 = vadd.f32 %v1724_v29, %v4311_v54 }
 0x7f8   : > { %3271 = vmatprep.mubr.msk.f32.mxu0 %vm374_vm0, %v4661_v31 }
 0x7f9   : > { %3272 = vmatmul.mubr.msk.f32.gmra.mrb[36].mxu0 %vm374_vm0, %v4664_v17 }
 0x7fc   : > { %v3244_v48 = vpop.f32.mrb[22].mxu1 }
 0x7fd   : > { %v1734_v53 = vpop.f32.mrb[23].mxu1  ;;  %v4674_v28 = vadd.f32 %v3244_v48, %v4324_v13 }
 0x7fe   : > { %v4671_v20 = vadd.f32 %v1734_v53, %v4321_v63 }
 0x800   : > { %3274 = vmatprep.mubr.msk.f32.mxu0 %vm374_vm0, %v4671_v20 }
 0x801   : > { %3275 = vmatmul.mubr.msk.f32.gmra.mrb[38].mxu0 %vm374_vm0, %v4674_v28 }
 0x805   : > { %v3247_v54 = vpop.f32.mrb[24].mxu1 }
 0x806   : > { %v1744_v2 = vpop.f32.mrb[25].mxu1  ;;  %v4684_v30 = vadd.f32 %v3247_v54, %v4334_v6 }
 0x807   : > { %v4681_v18 = vadd.f32 %v1744_v2, %v4331_v8 }
 0x809   : > { %3277 = vmatprep.mubr.msk.f32.mxu0 %vm374_vm0, %v4681_v18 }
 0x80a   : > { %3278 = vmatmul.mubr.msk.f32.gmra.mrb[40].mxu0 %vm374_vm0, %v4684_v30 }
 0x80d   : > { %v3250_v63 = vpop.f32.mrb[26].mxu1 }
 0x80e   : > { %v1754_v13 = vpop.f32.mrb[27].mxu1  ;;  %v4694_v15 = vadd.f32 %v3250_v63, %v4344_v34 }
 0x80f   : > { %v4691_v9 = vadd.f32 %v1754_v13, %v4341_v62 }
 0x811   : > { %3280 = vmatprep.mubr.msk.f32.mxu0 %vm374_vm0, %v4691_v9 }
 0x812   : > { %3281 = vmatmul.mubr.msk.f32.gmra.mrb[42].mxu0 %vm374_vm0, %v4694_v15 }
 0x815   : > { %v3253_v8 = vpop.f32.mrb[28].mxu1 }
 0x816   : > { %v1764_v6 = vpop.f32.mrb[29].mxu1  ;;  %v4704_v23 = vadd.f32 %v3253_v8, %v4354_v33 }
 0x817   : > { %v4701_v57 = vadd.f32 %v1764_v6, %v4351_v61  ;;  %v2014_v61 = vsub.s32 4, %v3884_v1 }
 0x819   : > { %3283 = vmatprep.mubr.msk.f32.mxu0 %vm374_vm0, %v4701_v57  ;;  %v4722_v7 = vrot.slane %v4373_v59, %v2014_v61 }
 0x81a   : > { %3284 = vmatmul.mubr.msk.f32.gmra.mrb[44].mxu0 %vm374_vm0, %v4704_v23 }
 0x81c   : > { %v3256_v62 = vpop.f32.mrb[30].mxu1 }
 0x81d   : > { %v1774_v34 = vpop.f32.mrb[31].mxu1  ;;  %v4714_v21 = vadd.f32 %v3256_v62, %v4364_v36 }
 0x81e   : > { %v4711_v44 = vadd.f32 %v1774_v34, %v4361_v43 }
 0x820   : > { %3286 = vmatprep.mubr.msk.f32.mxu0 %vm374_vm0, %v4711_v44 }
 0x821   : > { %3287 = vmatmul.mubr.msk.f32.gmra.mrb[46].mxu0 %vm374_vm0, %v4714_v21 }
 0x8bc   : > { %v3267_v33 = vpop.f32.mrb[32].mxu0 }
 0x8bd   : > { %v1923_v52 = vadd.f32 %v3267_v33, %v3906_v16  ;;  %v1917_v46 = vpop.f32.mrb[33].mxu0 }
 0x8be   : > { %v1918_v43 = vadd.f32 %v1917_v46, %v3906_v16 }
 0x8bf   : > { %v4726_v55 = vmax.f32 %v1923_v52, 0.0 }
 0x8c0   : > { %v4728_v36 = vmax.f32 %v1918_v43, 0.0 }
 0x8c1   : > { %v2017_v40 = vmul.f32 %v4722_v7, %v4726_v55 }
 0x8c2   : > { %v3465_v45 = vpack.c.bf16 %v4726_v55, %v4728_v36  ;;  %v2016_v1 = vmul.f32 %v4722_v7, %v4728_v36 }
 0x8c3   : > { %v2035_v59 = vsel %vm374_vm0, %v2017_v40, 0.0 }
 0x8c4   : > { %2036 = vadd.xlane.f32.xlu0 %v2035_v59  ;;  %v3270_v5 = vpop.f32.mrb[34].mxu0  ;;  %3466 = vmatprep.subr.bf16.mxu1 %v3465_v45  ;;  %v2032_v41 = vsel %vm374_vm0, %v2016_v1, 0.0 }
 0x8c5   : > { %v1933_v11 = vadd.f32 %v3270_v5, %v3906_v16  ;;  %3468 = vmatpush3.bf16.msra.mxu1 %v3465_v45  ;;  %2033 = vadd.xlane.f32.xlu1 %v2032_v41  ;;  %v1927_v35 = vpop.f32.mrb[35].mxu0 }
 0x8c6   : > { %v1928_v4 = vadd.f32 %v1927_v35, %v3906_v16 }
 0x8c7   : > { %v4740_v58 = vmax.f32 %v1933_v11, 0.0 }
 0x8c8   : > { %v4742_v25 = vmax.f32 %v1928_v4, 0.0 }
 0x8c9   : > { %v2019_v47 = vmul.f32 %v4722_v7, %v4740_v58 }
 0x8ca   : > { %v3469_v51 = vpack.c.bf16 %v4740_v58, %v4742_v25  ;;  %v2018_v49 = vmul.f32 %v4722_v7, %v4742_v25 }
 0x8cb   : > { %v2041_v26 = vsel %vm374_vm0, %v2019_v47, 0.0 }
 0x8cc   : > { %2042 = vadd.xlane.f32.xlu1 %v2041_v26  ;;  %v3273_v60 = vpop.f32.mrb[36].mxu0  ;;  %3470 = vmatprep.subr.bf16.mxu1 %v3469_v51  ;;  %v2038_v3 = vsel %vm374_vm0, %v2018_v49, 0.0 }
 0x8cd   : > { %v1943_v10 = vadd.f32 %v3273_v60, %v3906_v16  ;;  %3472 = vmatpush3.bf16.msra.mxu1 %v3469_v51  ;;  %2039 = vadd.xlane.f32.xlu0 %v2038_v3  ;;  %v1937_v56 = vpop.f32.mrb[37].mxu0 }
 0x8ce   : > { %v1938_v39 = vadd.f32 %v1937_v56, %v3906_v16 }
 0x8cf   : > { %v4754_v14 = vmax.f32 %v1943_v10, 0.0 }
 0x8d0   : > { %v4756_v37 = vmax.f32 %v1938_v39, 0.0 }
 0x8d1   : > { %v2021_v42 = vmul.f32 %v4722_v7, %v4754_v14 }
 0x8d2   : > { %v3473_v27 = vpack.c.bf16 %v4754_v14, %v4756_v37  ;;  %v2020_v32 = vmul.f32 %v4722_v7, %v4756_v37 }
 0x8d3   : > { %v2047_v38 = vsel %vm374_vm0, %v2021_v42, 0.0 }
 0x8d4   : > { %2048 = vadd.xlane.f32.xlu1 %v2047_v38  ;;  %v3276_v50 = vpop.f32.mrb[38].mxu0  ;;  %3474 = vmatprep.subr.bf16.mxu1 %v3473_v27  ;;  %v2044_v29 = vsel %vm374_vm0, %v2020_v32, 0.0 }
 0x8d5   : > { %v1953_v48 = vadd.f32 %v3276_v50, %v3906_v16  ;;  %3476 = vmatpush3.bf16.msra.mxu1 %v3473_v27  ;;  %2045 = vadd.xlane.f32.xlu0 %v2044_v29  ;;  %v1947_v53 = vpop.f32.mrb[39].mxu0 }
 0x8d6   : > { %v1948_v54 = vadd.f32 %v1947_v53, %v3906_v16 }
 0x8d7   : > { %v4768_v2 = vmax.f32 %v1953_v48, 0.0 }
 0x8d8   : > { %v4770_v63 = vmax.f32 %v1948_v54, 0.0 }
 0x8d9   : > { %v2023_v13 = vmul.f32 %v4722_v7, %v4768_v2 }
 0x8da   : > { %v3477_v8 = vpack.c.bf16 %v4768_v2, %v4770_v63  ;;  %v2022_v6 = vmul.f32 %v4722_v7, %v4770_v63 }
 0x8db   : > { %v2053_v62 = vsel %vm374_vm0, %v2023_v13, 0.0 }
 0x8dc   : > { %2054 = vadd.xlane.f32.xlu1 %v2053_v62  ;;  %3478 = vmatprep.subr.bf16.mxu1 %v3477_v8  ;;  %v2050_v34 = vsel %vm374_vm0, %v2022_v6, 0.0 }
 0x8dd   : > { %3480 = vmatpush3.bf16.msra.mxu1 %v3477_v8  ;;  %2051 = vadd.xlane.f32.xlu0 %v2050_v34  ;;  %v3279_v61 = vpop.f32.mrb[40].mxu0 }
 0x8de   : > { %v1963_v33 = vadd.f32 %v3279_v61, %v3906_v16  ;;  %v1957_v52 = vpop.f32.mrb[41].mxu0 }
 0x8df   : > { %v1958_v46 = vadd.f32 %v1957_v52, %v3906_v16 }
 0x8e0   : > { %v4782_v43 = vmax.f32 %v1963_v33, 0.0 }
 0x8e1   : > { %v2004_v40 = vmax.f32 %v1958_v46, 0.0 }
 0x8e2   : > { %v2025_v41 = vmul.f32 %v4722_v7, %v4782_v43 }
 0x8e3   : > { %v3481_v45 = vpack.c.bf16 %v4782_v43, %v2004_v40  ;;  %v2024_v1 = vmul.f32 %v4722_v7, %v2004_v40 }
 0x8e4   : > { %v2059_v49 = vsel %vm374_vm0, %v2025_v41, 0.0 }
 0x8e5   : > { %v3282_v59 = vpop.f32.mrb[42].mxu0  ;;  %3482 = vmatprep.subr.bf16.mxu1 %v3481_v45  ;;  %v2056_v5 = vsel %vm374_vm0, %v2024_v1, 0.0 }
 0x8e6   : > { %v1973_v11 = vadd.f32 %v3282_v59, %v3906_v16  ;;  %3484 = vmatpush3.bf16.msra.mxu1 %v3481_v45  ;;  %2057 = vadd.xlane.f32.xlu1 %v2056_v5  ;;  %v1967_v35 = vpop.f32.mrb[43].mxu0 }
 0x8e7   : > { %v1968_v4 = vadd.f32 %v1967_v35, %v3906_v16 }
 0x8e8   : > { %v2007_v47 = vmax.f32 %v1973_v11, 0.0 }
 0x8e9   : > { %v2006_v51 = vmax.f32 %v1968_v4, 0.0 }
 0x8ea   : > { %2060 = vadd.xlane.f32.xlu1 %v2059_v49  ;;  %v2027_v56 = vmul.f32 %v4722_v7, %v2007_v47 }
 0x8eb   : > { %v3485_v26 = vpack.c.bf16 %v2007_v47, %v2006_v51  ;;  %v2026_v60 = vmul.f32 %v4722_v7, %v2006_v51 }
 0x8ec   : > { %v2065_v50 = vsel %vm374_vm0, %v2027_v56, 0.0 }
 0x8ed   : > { %v3285_v3 = vpop.f32.mrb[44].mxu0  ;;  %3486 = vmatprep.subr.bf16.mxu1 %v3485_v26  ;;  %v2062_v10 = vsel %vm374_vm0, %v2026_v60, 0.0 }
 0x8ee   : > { %v1983_v39 = vadd.f32 %v3285_v3, %v3906_v16  ;;  %3488 = vmatpush3.bf16.msra.mxu1 %v3485_v26  ;;  %2063 = vadd.xlane.f32.xlu1 %v2062_v10  ;;  %v1977_v42 = vpop.f32.mrb[45].mxu0 }
 0x8ef   : > { %v1978_v27 = vadd.f32 %v1977_v42, %v3906_v16 }
 0x8f0   : > { %v2009_v32 = vmax.f32 %v1983_v39, 0.0 }
 0x8f1   : > { %v2008_v38 = vmax.f32 %v1978_v27, 0.0 }
 0x8f2   : > { %2066 = vadd.xlane.f32.xlu1 %v2065_v50  ;;  %v2029_v6 = vmul.f32 %v4722_v7, %v2009_v32 }
 0x8f3   : > { %v3489_v29 = vpack.c.bf16 %v2009_v32, %v2008_v38  ;;  %v2028_v48 = vmul.f32 %v4722_v7, %v2008_v38 }
 0x8f4   : > { %v3288_v53 = vpop.f32.mrb[46].mxu0  ;;  %v2071_v33 = vsel %vm374_vm0, %v2029_v6, 0.0 }
 0x8f5   : > { %v1993_v54 = vadd.f32 %v3288_v53, %v3906_v16  ;;  %v1987_v13 = vpop.f32.mrb[47].mxu0  ;;  %3490 = vmatprep.subr.bf16.mxu1 %v3489_v29  ;;  %v2068_v8 = vsel %vm374_vm0, %v2028_v48, 0.0 }
 0x8f6   : > { %v1988_v62 = vadd.f32 %v1987_v13, %v3906_v16  ;;  %3492 = vmatpush3.bf16.msra.mxu1 %v3489_v29  ;;  %2069 = vadd.xlane.f32.xlu1 %v2068_v8  ;;  %v2118_v16 = vpop.permute.xlu0 %2117 }
 0x8f7   : > { %v2011_v34 = vmax.f32 %v1993_v54, 0.0 }
 0x8f8   : > { %v2010_v61 = vmax.f32 %v1988_v62, 0.0 }
 0x8f9   : > { %v2031_v1 = vmul.f32 %v4722_v7, %v2011_v34 }
 0x8fa   : > { %2072 = vadd.xlane.f32.xlu1 %v2071_v33  ;;  %v3493_v52 = vpack.c.bf16 %v2011_v34, %v2010_v61  ;;  %v2030_v46 = vmul.f32 %v4722_v7, %v2010_v61  ;;  %v2130_v7 = vpop.permute.xlu0 %2129 }
 0x8fb   : > { %v2077_v59 = vsel %vm374_vm0, %v2031_v1, 0.0 }
 0x8fc   : > { %3494 = vmatprep.subr.bf16.mxu1 %v3493_v52  ;;  %v2074_v45 = vsel %vm374_vm0, %v2030_v46, 0.0 }
 0x8fd   : > { %3496 = vmatpush3.bf16.msra.mxu1 %v3493_v52 }
 0x8fe   : > { %2075 = vadd.xlane.f32.xlu1 %v2074_v45 }
 0x902   : > { %2078 = vadd.xlane.f32.xlu1 %v2077_v59 }
 0x90a   : > { %2080 = vxpose.xlu0.b32.start [1/16] (narrow) %v4728_v36, 32 }
 0x90e   : > { %2081 = vxpose.xlu0.b32.cont [2/16] (narrow) %v4726_v55, 32 }
 0x912   : > { %2082 = vxpose.xlu0.b32.cont [3/16] (narrow) %v4742_v25, 32 }
 0x916   : > { %2083 = vxpose.xlu0.b32.cont [4/16] (narrow) %v4740_v58, 32 }
 0x91a   : > { %2084 = vxpose.xlu0.b32.cont [5/16] (narrow) %v4756_v37, 32  ;;  %v2122_v37 = vpop.permute.xlu1 %2121 }
 0x91e   : > { %2085 = vxpose.xlu0.b32.cont [6/16] (narrow) %v4754_v14, 32 }
 0x922   : > { %2086 = vxpose.xlu0.b32.cont [7/16] (narrow) %v4770_v63, 32 }
 0x926   : > { %2087 = vxpose.xlu0.b32.cont [8/16] (narrow) %v4768_v2, 32  ;;  %v2126_v2 = vpop.permute.xlu1 %2125 }
 0x92a   : > { %2088 = vxpose.xlu0.b32.cont [9/16] (narrow) %v2004_v40, 32 }
 0x92e   : > { %2089 = vxpose.xlu0.b32.cont [10/16] (narrow) %v4782_v43, 32 }
 0x932   : > { %2090 = vxpose.xlu0.b32.cont [11/16] (narrow) %v2006_v51, 32 }
 0x936   : > { %2091 = vxpose.xlu0.b32.cont [12/16] (narrow) %v2007_v47, 32 }
 0x93a   : > { %2092 = vxpose.xlu0.b32.cont [13/16] (narrow) %v2008_v38, 32 }
 0x93e   : > { %2093 = vxpose.xlu0.b32.cont [14/16] (narrow) %v2009_v32, 32 }
 0x942   : > { %2094 = vxpose.xlu0.b32.cont [15/16] (narrow) %v2010_v61, 32 }
 0x946   : > { %2095 = vxpose.xlu0.b32.end [16/16] (narrow) %v2011_v34, 32  ;;  %v3728_v34 = vld [vmem:[%s4081_s9 + $0x8] sm:$0xff] }
 0x951   : > { %v2037_v55 = vpop.xlane.xlu0 %2036 }
 0x952   : > { %v2034_v10 = vpop.xlane.xlu1 %2033 }
 0x959   : > { %v2043_v42 = vpop.xlane.xlu1 %2042 }
 0x95a   : > { %v2040_v36 = vpop.xlane.xlu0 %2039 }
 0x961   : > { %v2049_v48 = vpop.xlane.xlu1 %2048 }
 0x962   : > { %v2046_v58 = vpop.xlane.xlu0 %2045 }
 0x969   : > { %v2055_v62 = vpop.xlane.xlu1 %2054 }
 0x96a   : > { %v2052_v25 = vpop.xlane.xlu0 %2051 }
 0x973   : > { %v2058_v45 = vpop.xlane.xlu1 %2057 }
 0x98a   : > { %v2096_v14 = vpop.trf.xlu0 }
 0x98b   : > { %v2131_v41 = vmul.f32 %v2118_v16, %v2096_v14 }
 0x98e   : > { %v2097_v63 = vpop.trf.xlu0 }
 0x98f   : > { %v2132_v5 = vmul.f32 %v2122_v37, %v2097_v63 }
 0x991   : > { %v2135_v11 = vadd.f32 %v2132_v5, %v2131_v41  ;;  %v3731_v5 = vld [vmem:[%s4081_s9 + $0x20] sm:$0xff] }
 0x992   : > { %v2098_v40 = vpop.trf.xlu0 }
 0x993   : > { %v2133_v43 = vmul.f32 %v2126_v2, %v2098_v40 }
 0x995   : > { %v2136_v4 = vadd.f32 %v2135_v11, %v2133_v43 }
 0x996   : > { %v2099_v35 = vpop.trf.xlu0 }
 0x997   : > { %v2134_v47 = vmul.f32 %v2130_v7, %v2099_v35  ;;  %v3732_v35 = vld [vmem:[%s4081_s9 + $0x28] sm:$0xff] }
 0x999   : > { %v2137_v51 = vadd.f32 %v2136_v4, %v2134_v47 }
 0x99b   : > { %v2138_v49 = vrot.slane %v2137_v51, 4 }
 0x99d   : > { %v2139_v26 = vadd.f32 %v2138_v49, %v2137_v51 }
 0x99f   : > { %v2140_v60 = vrot.slane %v2139_v26, 2 }
 0x9a1   : > { %v2141_v3 = vadd.f32 %v2140_v60, %v2139_v26  ;;  %v3733_v26 = vld [vmem:[%s4081_s9 + $0x30] sm:$0xff] }
 0x9a3   : > { %v2142_v56 = vrot.slane %v2141_v3, 1 }
 0x9a5   : > { %v4817_v39 = vadd.f32 %v2142_v56, %v2141_v3 }
 0x9a7   : > { %v2144_v27 = vadd.f32 %v4817_v39, %v2034_v10  ;;  %v2145_v32 = vadd.f32 %v4817_v39, %v2037_v55  ;;  %v2146_v29 = vadd.f32 %v4817_v39, %v2040_v36  ;;  %v2147_v6 = vadd.f32 %v4817_v39, %v2043_v42  ;;  %v2061_v55 = vpop.xlane.xlu1 %2060  ;;  %v3730_v36 = vld [vmem:[%s4081_s9 + $0x18] sm:$0xff] }
 0x9a8   : > { %v2148_v46 = vadd.f32 %v4817_v39, %v2046_v58  ;;  %v2149_v7 = vadd.f32 %v4817_v39, %v2049_v48  ;;  %v2150_v63 = vadd.f32 %v4817_v39, %v2052_v25  ;;  %v2151_v43 = vadd.f32 %v4817_v39, %v2055_v62  ;;  %v3734_v42 = vld [vmem:[%s4081_s9 + $0x38] sm:$0xff]  ;;  %v3735_v48 = vld [vmem:[%s4081_s9 + $0x48] sm:$0xff] }
 0x9a9   : > { %v2160_v38 = vmul.f32 0.01, %v2144_v27  ;;  %v2161_v50 = vmul.f32 0.01, %v2145_v32  ;;  %v2162_v8 = vmul.f32 0.01, %v2146_v29  ;;  %v2153_v25 = vadd.f32 %v4817_v39, %v2061_v55 }
 0x9aa   : > { %v2163_v52 = vmul.f32 0.01, %v2147_v6  ;;  %v2164_v16 = vmul.f32 0.01, %v2148_v46  ;;  %v2165_v58 = vmul.f32 0.01, %v2149_v7  ;;  %v2152_v56 = vadd.f32 %v4817_v39, %v2058_v45 }
 0x9ab   : > { %v2176_v53 = vmax.f32 %v2144_v27, %v2160_v38  ;;  %v2177_v13 = vmax.f32 %v2145_v32, %v2161_v50  ;;  %v2178_v33 = vmax.f32 %v2146_v29, %v2162_v8  ;;  %v2166_v41 = vmul.f32 0.01, %v2150_v63  ;;  %v2064_v11 = vpop.xlane.xlu1 %2063 }
 0x9ac   : > { %v2179_v59 = vmax.f32 %v2147_v6, %v2163_v52  ;;  %v2180_v37 = vmax.f32 %v2148_v46, %v2164_v16  ;;  %v2181_v40 = vmax.f32 %v2149_v7, %v2165_v58  ;;  %v2167_v51 = vmul.f32 0.01, %v2151_v43 }
 0x9ad   : > { %v4823_v54 = vadd.f32 %v4479_v12, %v2176_v53  ;;  %v4828_v61 = vadd.f32 %v3728_v34, %v2177_v13  ;;  %v3729_v12 = vld [vmem:[%s4081_s9 + $0x10] sm:$0xff]  ;;  %v2182_v47 = vmax.f32 %v2150_v63, %v2166_v41  ;;  %v2169_v10 = vmul.f32 0.01, %v2153_v25  ;;  %v3736_v34 = vld [vmem:[%s4081_s9 + $0x40] sm:$0xff] }
 0x9ae   : > { %v4833_v1 = vadd.f32 %v3729_v12, %v2178_v33  ;;  %v4838_v14 = vadd.f32 %v3730_v36, %v2179_v59  ;;  %v4843_v2 = vadd.f32 %v3731_v5, %v2180_v37  ;;  %v4848_v4 = vadd.f32 %v3732_v35, %v2181_v40  ;;  %v3737_v12 = vld [vmem:[%s4081_s9 + $0x58] sm:$0xff]  ;;  %v3738_v37 = vld [vmem:[%s4081_s9 + $0x50] sm:$0xff] }
 0x9af   : > { %2208 = vmax.xlane.f32.xlu1 %v4823_v54  ;;  %v2067_v49 = vpop.xlane.xlu1 %2066  ;;  %v4853_v60 = vadd.f32 %v3733_v26, %v2182_v47  ;;  %v2183_v3 = vmax.f32 %v2151_v43, %v2167_v51  ;;  %v2185_v32 = vmax.f32 %v2153_v25, %v2169_v10  ;;  %v2168_v38 = vmul.f32 0.01, %v2152_v56  ;;  %v3739_v43 = vld [vmem:[%s4081_s9 + $0x68] sm:$0xff]  ;;  %v3740_v25 = vld [vmem:[%s4081_s9 + $0x60] sm:$0xff]  ;;  %v3741_v10 = vld [vmem:[%s4081_s9 + $0x70] sm:$0xff] }
 0x9b0   : > { %v2155_v50 = vadd.f32 %v4817_v39, %v2067_v49  ;;  %v2154_v6 = vadd.f32 %v4817_v39, %v2064_v11 }
 0x9b1   : > { %v4858_v27 = vadd.f32 %v3734_v42, %v2183_v3  ;;  %v4863_v53 = vadd.f32 %v3735_v48, %v2185_v32  ;;  %v2184_v13 = vmax.f32 %v2152_v56, %v2168_v38  ;;  %v3742_v32 = vld [vmem:[%s4081_s9 + $0x78] sm:$0xff] }
 0x9b2   : > { %v2171_v8 = vmul.f32 0.01, %v2155_v50  ;;  %v2170_v46 = vmul.f32 0.01, %v2154_v6 }
 0x9b3   : > { %2210 = vmax.xlane.f32.xlu1 %v4828_v61  ;;  %v2070_v29 = vpop.xlane.xlu1 %2069  ;;  %v4868_v33 = vadd.f32 %v3736_v34, %v2184_v13 }
 0x9b4   : > { %v2187_v52 = vmax.f32 %v2155_v50, %v2171_v8  ;;  %v2186_v16 = vmax.f32 %v2154_v6, %v2170_v46  ;;  %v2156_v55 = vadd.f32 %v4817_v39, %v2070_v29 }
 0x9b6   : > { %v4873_v59 = vadd.f32 %v3737_v12, %v2187_v52  ;;  %v4878_v58 = vadd.f32 %v3738_v37, %v2186_v16  ;;  %v2172_v5 = vmul.f32 0.01, %v2156_v55 }
 0x9b7   : > { %2212 = vmax.xlane.f32.xlu1 %v4833_v1  ;;  %v2073_v62 = vpop.xlane.xlu1 %2072 }
 0x9b8   : > { %v2157_v45 = vadd.f32 %v4817_v39, %v2073_v62  ;;  %v2188_v35 = vmax.f32 %v2156_v55, %v2172_v5 }
 0x9ba   : > { %v2173_v7 = vmul.f32 0.01, %v2157_v45  ;;  %v4888_v49 = vadd.f32 %v3740_v25, %v2188_v35 }
 0x9bb   : > { %2214 = vmax.xlane.f32.xlu1 %v4838_v14  ;;  %v2076_v36 = vpop.xlane.xlu1 %2075 }
 0x9bc   : > { %v2189_v63 = vmax.f32 %v2157_v45, %v2173_v7  ;;  %v2158_v40 = vadd.f32 %v4817_v39, %v2076_v36 }
 0x9be   : > { %v4883_v11 = vadd.f32 %v3739_v43, %v2189_v63  ;;  %v2174_v47 = vmul.f32 0.01, %v2158_v40 }
 0x9bf   : > { %2216 = vmax.xlane.f32.xlu1 %v4843_v2  ;;  %v2079_v41 = vpop.xlane.xlu1 %2078 }
 0x9c0   : > { %v2159_v51 = vadd.f32 %v4817_v39, %v2079_v41  ;;  %v2190_v26 = vmax.f32 %v2158_v40, %v2174_v47 }
 0x9c2   : > { %v2175_v3 = vmul.f32 0.01, %v2159_v51  ;;  %v4892_v56 = vadd.f32 %v3741_v10, %v2190_v26 }
 0x9c3   : > { %2218 = vmax.xlane.f32.xlu1 %v4848_v4 }
 0x9c4   : > { %v2191_v42 = vmax.f32 %v2159_v51, %v2175_v3 }
 0x9c6   : > { %v4896_v38 = vadd.f32 %v3742_v32, %v2191_v42 }
 0x9c7   : > { %2220 = vmax.xlane.f32.xlu1 %v4853_v60 }
 0x9cb   : > { %2222 = vmax.xlane.f32.xlu1 %v4858_v27 }
 0x9cf   : > { %2226 = vmax.xlane.f32.xlu1 %v4863_v53 }
 0x9d3   : > { %2224 = vmax.xlane.f32.xlu1 %v4868_v33 }
 0x9d7   : > { %2230 = vmax.xlane.f32.xlu1 %v4873_v59 }
 0x9db   : > { %2228 = vmax.xlane.f32.xlu1 %v4878_v58 }
 0x9df   : > { %2234 = vmax.xlane.f32.xlu1 %v4883_v11 }
 0x9e3   : > { %2232 = vmax.xlane.f32.xlu1 %v4888_v49 }
 0x9e7   : > { %2236 = vmax.xlane.f32.xlu1 %v4892_v56 }
 0x9eb   : > { %2238 = vmax.xlane.f32.xlu1 %v4896_v38 }
 0xa3c   : > { %v2209_v39 = vpop.xlane.xlu1 %2208 }
 0xa3d   : > { %v2240_v50 = vsub.f32 %v4823_v54, %v2209_v39 }
 0xa3f   : > { %v2256_v29 = vmul.f32 1.442695, %v2240_v50 }
 0xa40   : > { %v2211_v48 = vpop.xlane.xlu1 %2210 }
 0xa41   : > { %3658 = vpow2.f32 %v2256_v29  ;;  %v2241_v13 = vsub.f32 %v4828_v61, %v2211_v48 }
 0xa43   : > { %v2258_v8 = vmul.f32 1.442695, %v2241_v13 }
 0xa44   : > { %v2213_v6 = vpop.xlane.xlu1 %2212 }
 0xa45   : > { %3660 = vpow2.f32 %v2258_v8  ;;  %v2242_v62 = vsub.f32 %v4833_v1, %v2213_v6 }
 0xa47   : > { %v2260_v34 = vmul.f32 1.442695, %v2242_v62 }
 0xa48   : > { %v2215_v52 = vpop.xlane.xlu1 %2214 }
 0xa49   : > { %3662 = vpow2.f32 %v2260_v34  ;;  %v2243_v46 = vsub.f32 %v4838_v14, %v2215_v52 }
 0xa4b   : > { %v4903_v45 = vpop.eup %3658  ;;  %v2262_v12 = vmul.f32 1.442695, %v2243_v46 }
 0xa4c   : > { %2288 = vadd.xlane.f32.xlu1 %v4903_v45  ;;  %v2217_v54 = vpop.xlane.xlu1 %2216 }
 0xa4d   : > { %3664 = vpow2.f32 %v2262_v12  ;;  %v2244_v16 = vsub.f32 %v4843_v2, %v2217_v54 }
 0xa4f   : > { %v4907_v61 = vpop.eup %3660  ;;  %v2264_v7 = vmul.f32 1.442695, %v2244_v16 }
 0xa50   : > { %2290 = vadd.xlane.f32.xlu1 %v4907_v61  ;;  %v2219_v1 = vpop.xlane.xlu1 %2218 }
 0xa51   : > { %3666 = vpow2.f32 %v2264_v7  ;;  %v2245_v55 = vsub.f32 %v4848_v4, %v2219_v1 }
 0xa53   : > { %v4911_v36 = vpop.eup %3662  ;;  %v2266_v14 = vmul.f32 1.442695, %v2245_v55 }
 0xa54   : > { %2292 = vadd.xlane.f32.xlu0 %v4911_v36  ;;  %v2221_v37 = vpop.xlane.xlu1 %2220 }
 0xa55   : > { %3668 = vpow2.f32 %v2266_v14  ;;  %v2246_v63 = vsub.f32 %v4853_v60, %v2221_v37  ;;  %v366_v14 = vld [vmem:[%s5072_s5 + $0x8] sm:$0xff] }
 0xa57   : > { %v4915_v5 = vpop.eup %3664  ;;  %v2268_v2 = vmul.f32 1.442695, %v2246_v63 }
 0xa58   : > { %2294 = vadd.xlane.f32.xlu1 %v4915_v5  ;;  %v2223_v40 = vpop.xlane.xlu1 %2222 }
 0xa59   : > { %3670 = vpow2.f32 %v2268_v2  ;;  %v2247_v41 = vsub.f32 %v4858_v27, %v2223_v40 }
 0xa5b   : > { %v4919_v43 = vpop.eup %3666  ;;  %v2270_v4 = vmul.f32 1.442695, %v2247_v41 }
 0xa5c   : > { %2296 = vadd.xlane.f32.xlu1 %v4919_v43  ;;  %v2227_v35 = vpop.xlane.xlu1 %2226 }
 0xa5d   : > { %3672 = vpow2.f32 %v2270_v4  ;;  %v2249_v47 = vsub.f32 %v4863_v53, %v2227_v35 }
 0xa5f   : > { %v4923_v51 = vpop.eup %3668  ;;  %v2274_v60 = vmul.f32 1.442695, %v2249_v47 }
 0xa60   : > { %2298 = vadd.xlane.f32.xlu1 %v4923_v51  ;;  %v2225_v25 = vpop.xlane.xlu1 %2224 }
 0xa61   : > { %3674 = vpow2.f32 %v2274_v60  ;;  %v2248_v26 = vsub.f32 %v4868_v33, %v2225_v25 }
 0xa63   : > { %v4927_v3 = vpop.eup %3670  ;;  %v2272_v27 = vmul.f32 1.442695, %v2248_v26 }
 0xa64   : > { %2300 = vadd.xlane.f32.xlu1 %v4927_v3  ;;  %v2231_v10 = vpop.xlane.xlu1 %2230 }
 0xa65   : > { %3676 = vpow2.f32 %v2272_v27  ;;  %v2251_v42 = vsub.f32 %v4873_v59, %v2231_v10 }
 0xa67   : > { %v4931_v32 = vpop.eup %3672  ;;  %v2278_v53 = vmul.f32 1.442695, %v2251_v42 }
 0xa68   : > { %2302 = vadd.xlane.f32.xlu1 %v4931_v32  ;;  %v2229_v39 = vpop.xlane.xlu1 %2228 }
 0xa69   : > { %3678 = vpow2.f32 %v2278_v53  ;;  %v2250_v50 = vsub.f32 %v4878_v58, %v2229_v39 }
 0xa6b   : > { %v4935_v29 = vpop.eup %3674  ;;  %v2276_v33 = vmul.f32 1.442695, %v2250_v50 }
 0xa6c   : > { %2306 = vadd.xlane.f32.xlu1 %v4935_v29  ;;  %v2235_v48 = vpop.xlane.xlu1 %2234 }
 0xa6d   : > { %3680 = vpow2.f32 %v2276_v33  ;;  %v2253_v13 = vsub.f32 %v4883_v11, %v2235_v48 }
 0xa6f   : > { %v4939_v8 = vpop.eup %3676  ;;  %v2282_v59 = vmul.f32 1.442695, %v2253_v13 }
 0xa70   : > { %2304 = vadd.xlane.f32.xlu1 %v4939_v8  ;;  %v2233_v6 = vpop.xlane.xlu1 %2232 }
 0xa71   : > { %3682 = vpow2.f32 %v2282_v59  ;;  %v2252_v62 = vsub.f32 %v4888_v49, %v2233_v6 }
 0xa73   : > { %v4943_v34 = vpop.eup %3678  ;;  %v2280_v58 = vmul.f32 1.442695, %v2252_v62 }
 0xa74   : > { %2310 = vadd.xlane.f32.xlu1 %v4943_v34  ;;  %v2237_v52 = vpop.xlane.xlu1 %2236 }
 0xa75   : > { %3684 = vpow2.f32 %v2280_v58  ;;  %v2254_v46 = vsub.f32 %v4892_v56, %v2237_v52 }
 0xa77   : > { %v4947_v12 = vpop.eup %3680  ;;  %v2284_v11 = vmul.f32 1.442695, %v2254_v46 }
 0xa78   : > { %2308 = vadd.xlane.f32.xlu1 %v4947_v12  ;;  %v2239_v54 = vpop.xlane.xlu1 %2238 }
 0xa79   : > { %3686 = vpow2.f32 %v2284_v11  ;;  %v2255_v16 = vsub.f32 %v4896_v38, %v2239_v54  ;;  %v365_v38 = vld [vmem:[%s5072_s5] sm:$0xff] }
 0xa7a   : > { %v3497_v37 = vpack.c.bf16 %v366_v14, %v365_v38 }
 0xa7b   : > { %v4951_v7 = vpop.eup %3682  ;;  %v2286_v49 = vmul.f32 1.442695, %v2255_v16 }
 0xa7c   : > { %2314 = vadd.xlane.f32.xlu1 %v4951_v7  ;;  %3498 = vmatprep.subr.bf16.mxu0 %v3497_v37 }
 0xa7d   : > { %3688 = vpow2.f32 %v2286_v49  ;;  %3505 = vmatprep.subr.bf16.mxu1 %v3497_v37  ;;  %3500 = vmatpush3.bf16.msra.mxu0 %v3497_v37 }
 0xa7f   : > { %v4954_v1 = vpop.eup %3684 }
 0xa80   : > { %2312 = vadd.xlane.f32.xlu1 %v4954_v1 }
 0xa83   : > { %v4957_v56 = vpop.eup %3686 }
 0xa84   : > { %2316 = vadd.xlane.f32.xlu1 %v4957_v56 }
 0xa87   : > { %v4960_v55 = vpop.eup %3688 }
 0xa88   : > { %2318 = vadd.xlane.f32.xlu0 %v4960_v55 }
 0xad9   : > { %v2289_v63 = vpop.xlane.xlu1 %2288 }
 0xada   : > { %3690 = vrcp.f32 %v2289_v63 }
 0xadd   : > { %v2291_v2 = vpop.xlane.xlu1 %2290 }
 0xade   : > { %3692 = vrcp.f32 %v2291_v2 }
 0xae1   : > { %v2293_v40 = vpop.xlane.xlu0 %2292 }
 0xae2   : > { %3694 = vrcp.f32 %v2293_v40 }
 0xae4   : > { %v3691_v41 = vpop.eup %3690 }
 0xae5   : > { %v2295_v4 = vpop.xlane.xlu1 %2294  ;;  %v2321_v35 = vmul.f32 %v3691_v41, %v4903_v45 }
 0xae6   : > { %3696 = vrcp.f32 %v2295_v4 }
 0xae7   : > { %3321 = vmatprep.mubr.f32.mxu1 %v2321_v35 }
 0xae8   : > { %v3693_v47 = vpop.eup %3692 }
 0xae9   : > { %v2323_v60 = vmul.f32 %v3693_v47, %v4907_v61  ;;  %v2297_v25 = vpop.xlane.xlu1 %2296 }
 0xaea   : > { %3698 = vrcp.f32 %v2297_v25 }
 0xaeb   : > { %3322 = vmatmul.mubr.f32.vlgmr.msra.gmra.mrb[32].mxu1 %v2323_v60 }
 0xaec   : > { %v3695_v26 = vpop.eup %3694  ;;  %3507 = vmatpush3.bf16.msra.mxu1 %v3497_v37 }
 0xaed   : > { %v2299_v27 = vpop.xlane.xlu1 %2298  ;;  %v2325_v10 = vmul.f32 %v3695_v26, %v4911_v36 }
 0xaee   : > { %3700 = vrcp.f32 %v2299_v27 }
 0xaef   : > { %3324 = vmatprep.mubr.f32.mxu1 %v2325_v10 }
 0xaf0   : > { %v3697_v42 = vpop.eup %3696 }
 0xaf1   : > { %v2301_v53 = vpop.xlane.xlu1 %2300  ;;  %v2327_v39 = vmul.f32 %v3697_v42, %v4915_v5 }
 0xaf2   : > { %3702 = vrcp.f32 %v2301_v53 }
 0xaf3   : > { %3325 = vmatmul.mubr.f32.gmra.mrb[34].mxu1 %v2327_v39 }
 0xaf4   : > { %v3699_v45 = vpop.eup %3698 }
 0xaf5   : > { %v2303_v50 = vpop.xlane.xlu1 %2302  ;;  %v2329_v61 = vmul.f32 %v3699_v45, %v4919_v43 }
 0xaf6   : > { %3704 = vrcp.f32 %v2303_v50 }
 0xaf7   : > { %3327 = vmatprep.mubr.f32.mxu1 %v2329_v61 }
 0xaf8   : > { %v3701_v33 = vpop.eup %3700 }
 0xaf9   : > { %v2307_v48 = vpop.xlane.xlu1 %2306  ;;  %v2331_v13 = vmul.f32 %v3701_v33, %v4923_v51 }
 0xafa   : > { %3706 = vrcp.f32 %v2307_v48 }
 0xafb   : > { %3328 = vmatmul.mubr.f32.gmra.mrb[36].mxu1 %v2331_v13 }
 0xafc   : > { %v3703_v36 = vpop.eup %3702 }
 0xafd   : > { %v2305_v59 = vpop.xlane.xlu1 %2304  ;;  %v2333_v6 = vmul.f32 %v3703_v36, %v4927_v3 }
 0xafe   : > { %3708 = vrcp.f32 %v2305_v59 }
 0xaff   : > { %3330 = vmatprep.mubr.f32.mxu1 %v2333_v6 }
 0xb00   : > { %v3705_v5 = vpop.eup %3704 }
 0xb01   : > { %v2311_v62 = vpop.xlane.xlu1 %2310  ;;  %v2335_v58 = vmul.f32 %v3705_v5, %v4931_v32 }
 0xb02   : > { %3710 = vrcp.f32 %v2311_v62 }
 0xb03   : > { %3331 = vmatmul.mubr.f32.gmra.mrb[38].mxu1 %v2335_v58 }
 0xb04   : > { %v3707_v52 = vpop.eup %3706 }
 0xb05   : > { %v2309_v43 = vpop.xlane.xlu1 %2308  ;;  %v2339_v54 = vmul.f32 %v3707_v52, %v4935_v29 }
 0xb06   : > { %3712 = vrcp.f32 %v2309_v43 }
 0xb08   : > { %v3709_v46 = vpop.eup %3708 }
 0xb09   : > { %v2315_v11 = vpop.xlane.xlu1 %2314  ;;  %v2337_v51 = vmul.f32 %v3709_v46, %v4939_v8 }
 0xb0a   : > { %3714 = vrcp.f32 %v2315_v11 }
 0xb0b   : > { %3333 = vmatprep.mubr.f32.mxu1 %v2337_v51 }
 0xb0c   : > { %3334 = vmatmul.mubr.f32.gmra.mrb[40].mxu1 %v2339_v54  ;;  %v3711_v16 = vpop.eup %3710 }
 0xb0d   : > { %v2313_v3 = vpop.xlane.xlu1 %2312  ;;  %v2343_v14 = vmul.f32 %v3711_v16, %v4943_v34  ;;  %v367_v34 = vld [vmem:[%s5072_s5 + $0x10] sm:$0xff] }
 0xb0e   : > { %3716 = vrcp.f32 %v2313_v3 }
 0xb10   : > { %v3713_v49 = vpop.eup %3712 }
 0xb11   : > { %v2317_v38 = vpop.xlane.xlu1 %2316  ;;  %v2341_v32 = vmul.f32 %v3713_v49, %v4947_v12 }
 0xb12   : > { %3718 = vrcp.f32 %v2317_v38 }
 0xb13   : > { %3336 = vmatprep.mubr.f32.mxu1 %v2341_v32 }
 0xb14   : > { %3337 = vmatmul.mubr.f32.gmra.mrb[42].mxu1 %v2343_v14  ;;  %v3715_v8 = vpop.eup %3714 }
 0xb15   : > { %v2319_v37 = vpop.xlane.xlu0 %2318  ;;  %v2347_v2 = vmul.f32 %v3715_v8, %v4951_v7 }
 0xb16   : > { %3720 = vrcp.f32 %v2319_v37 }
 0xb18   : > { %v3717_v63 = vpop.eup %3716 }
 0xb19   : > { %v2345_v29 = vmul.f32 %v3717_v63, %v4954_v1  ;;  %v368_v1 = vld [vmem:[%s5072_s5 + $0x18] sm:$0xff] }
 0xb1a   : > { %v3501_v35 = vpack.c.bf16 %v368_v1, %v367_v34 }
 0xb1b   : > { %3339 = vmatprep.mubr.f32.mxu1 %v2345_v29 }
 0xb1c   : > { %v3719_v40 = vpop.eup %3718  ;;  %3340 = vmatmul.mubr.f32.gmra.mrb[44].mxu1 %v2347_v2  ;;  %3502 = vmatprep.subr.bf16.mxu0 %v3501_v35 }
 0xb1d   : > { %v2349_v41 = vmul.f32 %v3719_v40, %v4957_v56  ;;  %3506 = vmatprep.subr.bf16.mxu1 %v3501_v35  ;;  %3504 = vmatpush3.bf16.msra.mxu0 %v3501_v35 }
 0xb1e   : > { %3508 = vmatpush3.bf16.msra.mxu1 %v3501_v35 }
 0xb1f   : > { %3342 = vmatprep.mubr.f32.mxu1 %v2349_v41 }
 0xb20   : > { %v3721_v12 = vpop.eup %3720 }
 0xb21   : > { %v2351_v4 = vmul.f32 %v3721_v12, %v4960_v55 }
 0xb23   : > { %3343 = vmatmul.mubr.f32.gmra.mrb[46].mxu1 %v2351_v4 }
 0xbbe   : > { %v3323_v7 = vpop.f32.mrb[32].mxu1 }
 0xbbf   : > { %v2418_v56 = vpop.f32.mrb[33].mxu1  ;;  %v2498_v55 = vadd.f32 %v3323_v7, %v4644_v24 }
 0xbc0   : > { %v2497_v47 = vadd.f32 %v2418_v56, %v4641_v0 }
 0xbc2   : > { %3353 = vmatprep.mubr.msk.f32.mxu0 %vm374_vm0, %v2497_v47 }
 0xbc3   : > { %3354 = vmatmul.mubr.msk.f32.vlgmr.msra.gmra.mrb[48].mxu0 %vm374_vm0, %v2498_v55 }
 0xbc6   : > { %v3326_v60 = vpop.f32.mrb[34].mxu1 }
 0xbc7   : > { %v2428_v25 = vpop.f32.mrb[35].mxu1  ;;  %v2500_v27 = vadd.f32 %v3326_v60, %v4654_v22 }
 0xbc8   : > { %v2499_v26 = vadd.f32 %v2428_v25, %v4651_v19 }
 0xbca   : > { %3356 = vmatprep.mubr.msk.f32.mxu0 %vm374_vm0, %v2499_v26 }
 0xbcb   : > { %3357 = vmatmul.mubr.msk.f32.gmra.mrb[50].mxu0 %vm374_vm0, %v2500_v27 }
 0xbce   : > { %v3329_v10 = vpop.f32.mrb[36].mxu1 }
 0xbcf   : > { %v2438_v42 = vpop.f32.mrb[37].mxu1  ;;  %v2502_v24 = vadd.f32 %v3329_v10, %v4664_v17 }
 0xbd0   : > { %v2501_v0 = vadd.f32 %v2438_v42, %v4661_v31 }
 0xbd2   : > { %3359 = vmatprep.mubr.msk.f32.mxu0 %vm374_vm0, %v2501_v0 }
 0xbd3   : > { %3360 = vmatmul.mubr.msk.f32.gmra.mrb[52].mxu0 %vm374_vm0, %v2502_v24 }
 0xbd6   : > { %v3332_v53 = vpop.f32.mrb[38].mxu1 }
 0xbd7   : > { %v2448_v39 = vpop.f32.mrb[39].mxu1  ;;  %v2504_v22 = vadd.f32 %v3332_v53, %v4674_v28 }
 0xbd8   : > { %v2503_v19 = vadd.f32 %v2448_v39, %v4671_v20 }
 0xbda   : > { %3362 = vmatprep.mubr.msk.f32.mxu0 %vm374_vm0, %v2503_v19 }
 0xbdb   : > { %3363 = vmatmul.mubr.msk.f32.gmra.mrb[54].mxu0 %vm374_vm0, %v2504_v22 }
 0xbdf   : > { %v3335_v45 = vpop.f32.mrb[40].mxu1 }
 0xbe0   : > { %v2458_v50 = vpop.f32.mrb[41].mxu1  ;;  %v2506_v17 = vadd.f32 %v3335_v45, %v4684_v30 }
 0xbe1   : > { %v2505_v31 = vadd.f32 %v2458_v50, %v4681_v18 }
 0xbe3   : > { %3365 = vmatprep.mubr.msk.f32.mxu0 %vm374_vm0, %v2505_v31 }
 0xbe4   : > { %3366 = vmatmul.mubr.msk.f32.gmra.mrb[56].mxu0 %vm374_vm0, %v2506_v17 }
 0xbe7   : > { %v3338_v61 = vpop.f32.mrb[42].mxu1 }
 0xbe8   : > { %v2468_v33 = vpop.f32.mrb[43].mxu1  ;;  %v2508_v28 = vadd.f32 %v3338_v61, %v4694_v15 }
 0xbe9   : > { %v2507_v20 = vadd.f32 %v2468_v33, %v4691_v9 }
 0xbeb   : > { %3368 = vmatprep.mubr.msk.f32.mxu0 %vm374_vm0, %v2507_v20 }
 0xbec   : > { %3369 = vmatmul.mubr.msk.f32.gmra.mrb[58].mxu0 %vm374_vm0, %v2508_v28 }
 0xbef   : > { %v3341_v48 = vpop.f32.mrb[44].mxu1 }
 0xbf0   : > { %v2478_v13 = vpop.f32.mrb[45].mxu1  ;;  %v2510_v30 = vadd.f32 %v3341_v48, %v4704_v23 }
 0xbf1   : > { %v2509_v18 = vadd.f32 %v2478_v13, %v4701_v57  ;;  %v2886_v57 = vld [vmem:[%s5073_s6] ss:$0 sm:$0xff] }
 0xbf3   : > { %3371 = vmatprep.mubr.msk.f32.mxu0 %vm374_vm0, %v2509_v18 }
 0xbf4   : > { %3372 = vmatmul.mubr.msk.f32.gmra.mrb[60].mxu0 %vm374_vm0, %v2510_v30 }
 0xbf6   : > { %v3344_v36 = vpop.f32.mrb[46].mxu1 }
 0xbf7   : > { %v2488_v59 = vpop.f32.mrb[47].mxu1  ;;  %v2512_v15 = vadd.f32 %v3344_v36, %v4714_v21 }
 0xbf8   : > { %v2511_v9 = vadd.f32 %v2488_v59, %v4711_v44 }
 0xbfa   : > { %3374 = vmatprep.mubr.msk.f32.mxu1 %vm374_vm0, %v2511_v9 }
 0xbfb   : > { %3375 = vmatmul.mubr.msk.f32.vlgmr.msra.gmra.mrb[48].mxu1 %vm374_vm0, %v2512_v15 }
 0xc96   : > { %v3355_v6 = vpop.f32.mrb[48].mxu0 }
 0xc97   : > { %v2639_v23 = vadd.f32 %v3355_v6, %v2886_v57  ;;  %v2633_v5 = vpop.f32.mrb[49].mxu0 }
 0xc98   : > { %v2634_v44 = vadd.f32 %v2886_v57, %v2633_v5 }
 0xc99   : > { %v2713_v21 = vmax.f32 %v2639_v23, 0.0 }
 0xc9a   : > { %v2712_v62 = vmax.f32 %v2634_v44, 0.0 }
 0xc9b   : > { %2730 = vst.msk [vmem:[%s5030_s25 + $0x8] sm:$0xff] %vm2728_vm1, %v2713_v21 }
 0xc9c   : > { %2729 = vst.msk [vmem:[%s5030_s25] sm:$0xff] %vm2728_vm1, %v2712_v62 }
 0xc9e   : > { %v3358_v58 = vpop.f32.mrb[50].mxu0 }
 0xc9f   : > { %v2649_v43 = vadd.f32 %v3358_v58, %v2886_v57  ;;  %v2643_v52 = vpop.f32.mrb[51].mxu0 }
 0xca0   : > { %v2644_v46 = vadd.f32 %v2886_v57, %v2643_v52 }
 0xca1   : > { %v2715_v11 = vmax.f32 %v2649_v43, 0.0 }
 0xca2   : > { %v2714_v51 = vmax.f32 %v2644_v46, 0.0 }
 0xca3   : > { %2732 = vst.msk [vmem:[%s5030_s25 + $0x18] sm:$0xff] %vm2728_vm1, %v2715_v11 }
 0xca4   : > { %2731 = vst.msk [vmem:[%s5030_s25 + $0x10] sm:$0xff] %vm2728_vm1, %v2714_v51 }
 0xca6   : > { %v3361_v54 = vpop.f32.mrb[52].mxu0 }
 0xca7   : > { %v2659_v3 = vadd.f32 %v3361_v54, %v2886_v57  ;;  %v2653_v16 = vpop.f32.mrb[53].mxu0 }
 0xca8   : > { %v2654_v49 = vadd.f32 %v2886_v57, %v2653_v16 }
 0xca9   : > { %v2717_v38 = vmax.f32 %v2659_v3, 0.0 }
 0xcaa   : > { %v2716_v32 = vmax.f32 %v2654_v49, 0.0 }
 0xcab   : > { %2734 = vst.msk [vmem:[%s5030_s25 + $0x28] sm:$0xff] %vm2728_vm1, %v2717_v38 }
 0xcac   : > { %2733 = vst.msk [vmem:[%s5030_s25 + $0x20] sm:$0xff] %vm2728_vm1, %v2716_v32 }
 0xcae   : > { %v3364_v14 = vpop.f32.mrb[54].mxu0 }
 0xcaf   : > { %v2669_v37 = vadd.f32 %v3364_v14, %v2886_v57  ;;  %v2663_v8 = vpop.f32.mrb[55].mxu0 }
 0xcb0   : > { %v2664_v63 = vadd.f32 %v2886_v57, %v2663_v8 }
 0xcb1   : > { %v2719_v29 = vmax.f32 %v2669_v37, 0.0 }
 0xcb2   : > { %v2718_v2 = vmax.f32 %v2664_v63, 0.0 }
 0xcb3   : > { %2736 = vst.msk [vmem:[%s5030_s25 + $0x38] sm:$0xff] %vm2728_vm1, %v2719_v29 }
 0xcb4   : > { %2735 = vst.msk [vmem:[%s5030_s25 + $0x30] sm:$0xff] %vm2728_vm1, %v2718_v2 }
 0xcb7   : > { %v3367_v40 = vpop.f32.mrb[56].mxu0 }
 0xcb8   : > { %v2679_v41 = vadd.f32 %v3367_v40, %v2886_v57  ;;  %v2673_v12 = vpop.f32.mrb[57].mxu0 }
 0xcb9   : > { %v2674_v4 = vadd.f32 %v2886_v57, %v2673_v12 }
 0xcba   : > { %v2721_v34 = vmax.f32 %v2679_v41, 0.0 }
 0xcbb   : > { %v2720_v1 = vmax.f32 %v2674_v4, 0.0 }
 0xcbc   : > { %2738 = vst.msk [vmem:[%s5030_s25 + $0x48] sm:$0xff] %vm2728_vm1, %v2721_v34 }
 0xcbd   : > { %2737 = vst.msk [vmem:[%s5030_s25 + $0x40] sm:$0xff] %vm2728_vm1, %v2720_v1 }
 0xcbf   : > { %v3370_v35 = vpop.f32.mrb[58].mxu0 }
 0xcc0   : > { %v2689_v7 = vadd.f32 %v3370_v35, %v2886_v57  ;;  %v2683_v56 = vpop.f32.mrb[59].mxu0 }
 0xcc1   : > { %v2684_v47 = vadd.f32 %v2886_v57, %v2683_v56 }
 0xcc2   : > { %v2723_v55 = vmax.f32 %v2689_v7, 0.0 }
 0xcc3   : > { %v2722_v60 = vmax.f32 %v2684_v47, 0.0 }
 0xcc4   : > { %2740 = vst.msk [vmem:[%s5030_s25 + $0x58] sm:$0xff] %vm2728_vm1, %v2723_v55 }
 0xcc5   : > { %2739 = vst.msk [vmem:[%s5030_s25 + $0x50] sm:$0xff] %vm2728_vm1, %v2722_v60 }
 0xcc7   : > { %v3373_v25 = vpop.f32.mrb[60].mxu0 }
 0xcc8   : > { %v2699_v26 = vadd.f32 %v3373_v25, %v2886_v57  ;;  %v2693_v27 = vpop.f32.mrb[61].mxu0 }
 0xcc9   : > { %v2694_v10 = vadd.f32 %v2886_v57, %v2693_v27 }
 0xcca   : > { %v2725_v42 = vmax.f32 %v2699_v26, 0.0 }
 0xccb   : > { %v2724_v0 = vmax.f32 %v2694_v10, 0.0 }
 0xccc   : > { %2742 = vst.msk [vmem:[%s5030_s25 + $0x68] sm:$0xff] %vm2728_vm1, %v2725_v42 }
 0xccd   : > { %2741 = vst.msk [vmem:[%s5030_s25 + $0x60] sm:$0xff] %vm2728_vm1, %v2724_v0 }
 0xcce   : > { %v3376_v24 = vpop.f32.mrb[48].mxu1 }
 0xccf   : > { %v2709_v53 = vadd.f32 %v3376_v24, %v2886_v57  ;;  %v2703_v39 = vpop.f32.mrb[49].mxu1 }
 0xcd0   : > { %v2704_v19 = vadd.f32 %v2886_v57, %v2703_v39 }
 0xcd1   : > { %v2727_v22 = vmax.f32 %v2709_v53, 0.0 }
 0xcd2   : > { %v2726_v45 = vmax.f32 %v2704_v19, 0.0 }
 0xcd3   : > { %2744 = vst.msk [vmem:[%s5030_s25 + $0x78] sm:$0xff] %vm2728_vm1, %v2727_v22 }
 0xcd4   : > { %2743 = vst.msk [vmem:[%s5030_s25 + $0x70] sm:$0xff] %vm2728_vm1, %v2726_v45 }
 0xcd5 PF: > { %s18_s24 = sadd.s32 1, %s3781_s24  }
 0xcd6   : > { %p15_p3 = scmp.ge.s32.totalorder %s18_s24, 4  }
 0xcd8   :  { %17 = sbr.rel (!%p15_p3) target bundleno = 1 (0x1), region = 86 }
 0xcdf   :  { %2767 = vsyncpa [#allocation3], 1 }
 0xce0   :  { %2769 = vsyncpa [#allocation3 + $0x1], 1 }

</bundles_post_ra>
